<compile_context>
chip_gen: v5e
topology: v5e:2x2
jax: 0.10.0
libtpu: 0.0.40
codegen_flags: <defaults>
</compile_context>

<pallas_src>
import functools

import jax
import jax.numpy as jnp
from jax import lax
from jax.experimental import pallas as pl
from jax.experimental.pallas import tpu as pltpu

LANE = 128


# ----------------------------------------------------------------------------
# Small spec / padding helpers.
# ----------------------------------------------------------------------------
def _const_spec(shape):
    """Full-array block whose index is constant across the grid (stays resident)."""
    nd = len(shape)
    return pl.BlockSpec(tuple(shape), lambda l, nd=nd: (0,) * nd)


def _layer_spec(shape):
    """Stacked-weight block: leading dim indexed by the layer grid axis."""
    tail = tuple(shape[1:])
    nt = len(tail)
    return pl.BlockSpec((1,) + tail, lambda l, nt=nt: (l,) + (0,) * nt)


def _pad_cols(w, b, lanes=LANE):
    """Zero-pad a final-layer (Din, Dout) weight / (Dout,) bias up to >=128 lanes."""
    dout = w.shape[1]
    dpad = ((dout + lanes - 1) // lanes) * lanes
    if dpad != dout:
        w = jnp.pad(w, ((0, 0), (0, dpad - dout)))
        b = jnp.pad(b, (0, dpad - dout))
    return w, b.reshape(1, -1), dpad


def _pad_rows(w, rows):
    r = w.shape[0]
    if rows != r:
        w = jnp.pad(w, ((0, rows - r), (0, 0)))
    return w


# ----------------------------------------------------------------------------
# Kernel 1: fused graph network.
#   grid = (num_gconv_layers,), "arbitrary".
#   Each step runs one GraphTripleConv layer (avg pooling) with obj/pred vecs
#   resident in VMEM scratch; the last step also runs box_net and rel_aux.
#   Gathers and scatter-add pooling are one-hot matmuls; one-hots are rebuilt
#   in-kernel from the (T,1)/(1,T) index vectors (no dense (T,O) DMA, no XLU
#   transposes).
# ----------------------------------------------------------------------------
def _fused_graph_kernel(
        ov_in_ref, pv_in_ref, s_col_ref, o_col_ref, s_row_ref, o_row_ref, icnt_ref,
        w1s_ref, w1p_ref, w1o_ref, b1_ref,
        w2s_ref, b2s_ref, w2p_ref, b2p_ref, w2o_ref, b2o_ref,
        v1_ref, c1_ref, v2_ref, c2_ref,
        bw1_ref, bb1_ref, bw2_ref, bb2_ref,
        rw1sb_ref, rw1ob_ref, rw1sv_ref, rw1ov_ref, rb1_ref, rw2_ref, rb2_ref,
        obj_out_ref, pred_out_ref, boxes_out_ref, rel_out_ref,
        ov_scr, pv_scr):
    f32 = jnp.float32
    l = pl.program_id(0)
    last = pl.num_programs(0) - 1

    @pl.when(l == 0)
    def _():
        ov_scr[...] = ov_in_ref[...]
        pv_scr[...] = pv_in_ref[...]

    ov = ov_scr[...]                                   # (O, D)
    pv = pv_scr[...]                                   # (T, D)
    O = ov.shape[0]
    T = pv.shape[0]

    def dot(a, b):
        return jnp.dot(a, b, preferred_element_type=f32)

    # One-hot edge matrices in both orientations, built in-kernel (VPU filler).
    s1h = (s_col_ref[...] == lax.broadcasted_iota(jnp.int32, (T, O), 1)).astype(f32)
    o1h = (o_col_ref[...] == lax.broadcasted_iota(jnp.int32, (T, O), 1)).astype(f32)
    s1ht = (s_row_ref[...] == lax.broadcasted_iota(jnp.int32, (O, T), 0)).astype(f32)
    o1ht = (o_row_ref[...] == lax.broadcasted_iota(jnp.int32, (O, T), 0)).astype(f32)

    # --- GraphTripleConv layer l --------------------------------------------
    cur_s = dot(s1h, ov)                               # gather obj_vecs[s]
    cur_o = dot(o1h, ov)                               # gather obj_vecs[o]

    # net1 layer 1 on concat([cur_s, pv, cur_o]) as row-split matmuls
    h1 = jnp.maximum(dot(cur_s, w1s_ref[0]) + dot(pv, w1p_ref[0])
                     + dot(cur_o, w1o_ref[0]) + b1_ref[0], 0.0)
    # net1 layer 2, column-split into new_s | new_p | new_o (ReLU final)
    new_s = jnp.maximum(dot(h1, w2s_ref[0]) + b2s_ref[0], 0.0)
    new_p = jnp.maximum(dot(h1, w2p_ref[0]) + b2p_ref[0], 0.0)
    new_o = jnp.maximum(dot(h1, w2o_ref[0]) + b2o_ref[0], 0.0)

    # scatter-add pooling as native (O,T)x(T,H) matmuls, avg by clamped counts
    pooled = (dot(s1ht, new_s) + dot(o1ht, new_o)) * icnt_ref[...]

    # net2
    h2 = jnp.maximum(dot(pooled, v1_ref[0]) + c1_ref[0], 0.0)
    new_obj = jnp.maximum(dot(h2, v2_ref[0]) + c2_ref[0], 0.0)

    ov_scr[...] = new_obj
    pv_scr[...] = new_p
    obj_out_ref[...] = new_obj
    pred_out_ref[...] = new_p

    # --- box_net + rel_aux fused into the final layer step -------------------
    @pl.when(l == last)
    def _():
        # box_net: 2-layer MLP with ReLU after both; head padded to 128 lanes
        # (padded columns are relu(0) == 0 exactly).
        bh = jnp.maximum(dot(new_obj, bw1_ref[...]) + bb1_ref[...], 0.0)
        boxes = jnp.maximum(dot(bh, bw2_ref[...]) + bb2_ref[...], 0.0)   # (O, 128)
        boxes_out_ref[...] = boxes

        # rel_aux: cat([boxes[s], boxes[o], obj_vecs[s], obj_vecs[o]]) -> MLP,
        # expressed as one-hot gathers + row-split W1 (box blocks zero-row-padded).
        s_b = dot(s1h, boxes)                          # (T, 128)
        o_b = dot(o1h, boxes)
        s_v = dot(s1h, new_obj)                        # (T, D)
        o_v = dot(o1h, new_obj)
        rh = jnp.maximum(dot(s_b, rw1sb_ref[...]) + dot(o_b, rw1ob_ref[...])
                         + dot(s_v, rw1sv_ref[...]) + dot(o_v, rw1ov_ref[...])
                         + rb1_ref[...], 0.0)
        rel_out_ref[...] = jnp.maximum(dot(rh, rw2_ref[...]) + rb2_ref[...], 0.0)


def fused_graph_net(params, obj_vecs, pred_vecs, s, o, inv_counts, cfg):
    O, D = obj_vecs.shape
    T = pred_vecs.shape[0]
    Hd = cfg["gconv_hidden_dim"]
    # model_layout.py requires embedding_dim == gconv_dim (rel_aux input dims).
    layers = [params["gconv0"]] + list(params["gconv_net"])
    L = len(layers)

    def split_layer(lp):
        n1, n2 = lp["net1"], lp["net2"]
        w1, b1, w2, b2 = n1["w1"], n1["b1"], n1["w2"], n1["b2"]
        w1s, w1p, w1o = w1[:D], w1[D:2 * D], w1[2 * D:]
        w2s, w2p, w2o = w2[:, :Hd], w2[:, Hd:Hd + D], w2[:, Hd + D:]
        b2s, b2p, b2o = b2[:Hd], b2[Hd:Hd + D], b2[Hd + D:]
        return (w1s, w1p, w1o, b1.reshape(1, -1),
                w2s, b2s.reshape(1, -1), w2p, b2p.reshape(1, -1),
                w2o, b2o.reshape(1, -1),
                n2["w1"], n2["b1"].reshape(1, -1), n2["w2"], n2["b2"].reshape(1, -1))

    per_layer = [split_layer(lp) for lp in layers]
    stacked = [jnp.stack([per_layer[li][k] for li in range(L)], axis=0)
               for k in range(14)]

    # box_net head padded to 128 lanes.
    bn = params["box_net"]
    bw2, bb2, boxpad = _pad_cols(bn["w2"], bn["b2"])
    # rel_aux: W1 row-split by concat order [s_box, o_box, s_vec, o_vec];
    # the two box blocks are zero-row-padded to match the padded boxes.
    ra = params["rel_aux"]
    rw1 = ra["w1"]
    rw1sb = _pad_rows(rw1[0:4], boxpad)
    rw1ob = _pad_rows(rw1[4:8], boxpad)
    rw1sv = rw1[8:8 + D]
    rw1ov = rw1[8 + D:8 + 2 * D]
    rw2, rb2, relpad = _pad_cols(ra["w2"], ra["b2"])

    s_col = s.astype(jnp.int32).reshape(T, 1)
    o_col = o.astype(jnp.int32).reshape(T, 1)
    s_row = s.astype(jnp.int32).reshape(1, T)
    o_row = o.astype(jnp.int32).reshape(1, T)

    const_args = [obj_vecs, pred_vecs, s_col, o_col, s_row, o_row, inv_counts]
    box_rel_args = [bn["w1"], bn["b1"].reshape(1, -1), bw2, bb2,
                    rw1sb, rw1ob, rw1sv, rw1ov, ra["b1"].reshape(1, -1), rw2, rb2]

    in_specs = ([_const_spec(a.shape) for a in const_args]
                + [_layer_spec(a.shape) for a in stacked]
                + [_const_spec(a.shape) for a in box_rel_args])

    out_shape = (jax.ShapeDtypeStruct((O, D), jnp.float32),
                 jax.ShapeDtypeStruct((T, D), jnp.float32),
                 jax.ShapeDtypeStruct((O, boxpad), jnp.float32),
                 jax.ShapeDtypeStruct((T, relpad), jnp.float32))
    out_specs = (_const_spec((O, D)), _const_spec((T, D)),
                 _const_spec((O, boxpad)), _const_spec((T, relpad)))

    obj_out, pred_out, boxes_pad, rel_pad = pl.pallas_call(
        _fused_graph_kernel,
        out_shape=out_shape,
        grid=(L,),
        in_specs=in_specs,
        out_specs=out_specs,
        scratch_shapes=[pltpu.VMEM((O, D), jnp.float32),
                        pltpu.VMEM((T, D), jnp.float32)],
        compiler_params=pltpu.CompilerParams(
            dimension_semantics=("arbitrary",)),
    )(*(const_args + stacked + box_rel_args))

    boxes_pred = boxes_pad[:, :4]
    rel_scores = rel_pad[:, :ra["w2"].shape[1]]
    return obj_out, pred_out, boxes_pred, rel_scores


# ----------------------------------------------------------------------------
# Kernel 2: fused boxes_to_layout (pooling='sum').
#   Per image n:  layout[n] = obj_vecs^T @ (soft_box_masks * (obj_to_img == n))
#   Soft masks reproduce F.grid_sample(bilinear, zeros padding,
#   align_corners=False) on a spatially constant 8x8 input, computed lane-dense
#   as (O, H*W).  Divides only at (O,1); row/col via shift/mask; image axis is
#   a "parallel" grid dimension (both v7x TensorCores get work).
# ----------------------------------------------------------------------------
def _layout_kernel(o2i_ref, boxes_ref, vecs_t_ref, out_ref, *, H, W, IN=8):
    f32 = jnp.float32
    n = pl.program_id(0)
    boxes = boxes_ref[...]                             # (O, 4)
    O = boxes.shape[0]
    HW = H * W

    x0 = boxes[:, 0:1]
    y0 = boxes[:, 1:2]
    x1 = boxes[:, 2:3]
    y1 = boxes[:, 3:4]
    ww = x1 - x0
    hh = y1 - y0
    eps = 1e-8
    valid = jnp.logical_and(jnp.abs(ww) > eps, jnp.abs(hh) > eps).astype(f32)
    # exact per-object reciprocals at (O,1); the (O,HW) tensors see only multiplies
    inv_ww = 1.0 / jnp.where(jnp.abs(ww) > eps, ww, 1.0)
    inv_hh = 1.0 / jnp.where(jnp.abs(hh) > eps, hh, 1.0)

    idx = lax.broadcasted_iota(jnp.int32, (O, HW), 1)
    if (W & (W - 1)) == 0:                             # power-of-two W: no divide
        row_i = idx >> (W.bit_length() - 1)
        col_i = idx & (W - 1)
    else:
        row_i = idx // W
        col_i = idx - row_i * W
    xs = col_i.astype(f32) * (1.0 / float(max(W - 1, 1)))   # torch.linspace(0,1,W)
    ys = row_i.astype(f32) * (1.0 / float(max(H - 1, 1)))
    X = (xs - x0) * inv_ww                             # normalized-in-box coords
    Y = (ys - y0) * inv_hh

    def cov(c01):
        # grid coord g = 2*c01 - 1; align_corners=False pixel p = ((g+1)*IN - 1)/2
        p = c01 * float(IN) - 0.5
        i0 = jnp.floor(p)
        f = p - i0
        in0 = jnp.logical_and(i0 >= 0.0, i0 <= float(IN - 1)).astype(f32)
        in1 = jnp.logical_and(i0 + 1.0 >= 0.0, i0 + 1.0 <= float(IN - 1)).astype(f32)
        return (1.0 - f) * in0 + f * in1

    masks = cov(X) * cov(Y)                            # (O, HW) lane-dense
    sel = (o2i_ref[...] == n).astype(f32) * valid      # (O, 1)
    masked = masks * sel

    out = jnp.dot(vecs_t_ref[...], masked, preferred_element_type=f32)   # (D, HW)
    out_ref[...] = out[None, :, :]


def boxes_to_layout(vecs, boxes, obj_to_img, num_images, H, W):
    O, D = vecs.shape
    o2i = obj_to_img.astype(jnp.int32).reshape(O, 1)
    vecs_t = vecs.T                                    # (D, O): native (M,K)x(K,N) in-kernel
    out = pl.pallas_call(
        functools.partial(_layout_kernel, H=H, W=W),
        out_shape=jax.ShapeDtypeStruct((num_images, D, H * W), jnp.float32),
        grid=(num_images,),
        in_specs=[
            pl.BlockSpec((O, 1), lambda n: (0, 0)),
            pl.BlockSpec((O, 4), lambda n: (0, 0)),
            pl.BlockSpec((D, O), lambda n: (0, 0)),
        ],
        out_specs=pl.BlockSpec((1, D, H * W), lambda n: (n, 0, 0)),
        compiler_params=pltpu.CompilerParams(dimension_semantics=("parallel",)),
    )(o2i, boxes, vecs_t)
    return out.reshape(num_images, D, H, W)            # NCHW


# ----------------------------------------------------------------------------
# Full Sg2ImModel.forward (default config path).
# ----------------------------------------------------------------------------
def sg2im_forward(params, objs, triples, obj_to_img, *, cfg, num_images):
    s = triples[:, 0]
    p = triples[:, 1]
    o = triples[:, 2]
    O = objs.shape[0]

    obj_vecs = params["obj_emb"][objs]
    pred_vecs = params["pred_emb"][p]

    # avg-pooling edge counts (clamped at 1), tiny one-off XLA glue.
    counts = jnp.zeros((O,), jnp.float32).at[s].add(1.0).at[o].add(1.0)
    inv_counts = (1.0 / jnp.maximum(counts, 1.0)).reshape(O, 1)

    obj_vecs_out, pred_vecs_out, boxes_pred, rel_scores = fused_graph_net(
        params, obj_vecs, pred_vecs, s, o, inv_counts, cfg)

    H, W = cfg["image_size"]
    layout = boxes_to_layout(obj_vecs_out, boxes_pred, obj_to_img, num_images, H, W)

    # TODO(synk): mask_net / sg_context_net / triplet nets / RefinementNetwork are
    # disabled under the default constructor args and never executed by forward().
    return (None, boxes_pred, None, objs, layout, boxes_pred, None, obj_to_img,
            None, None, rel_scores, obj_vecs_out, pred_vecs_out, None, None, None,
            None, None)


# ----------------------------------------------------------------------------
# Deterministic parameter init (shapes per the module's __init__).
# ----------------------------------------------------------------------------
def init_linear(key, din, dout):
    kw, kb = jax.random.split(key)
    w = jax.random.normal(kw, (din, dout), jnp.float32) / jnp.sqrt(float(din))
    b = jax.random.normal(kb, (dout,), jnp.float32) * 0.1
    return w, b


def init_mlp2(key, dims):
    k1, k2 = jax.random.split(key)
    w1, b1 = init_linear(k1, dims[0], dims[1])
    w2, b2 = init_linear(k2, dims[1], dims[2])
    return {"w1": w1, "b1": b1, "w2": w2, "b2": b2}


def init_gconv(key, din, dout, hidden):
    k1, k2 = jax.random.split(key)
    return {
        "net1": init_mlp2(k1, [3 * din, hidden, 2 * hidden + dout]),
        "net2": init_mlp2(k2, [hidden, hidden, dout]),
    }


if __name__ == "__main__":
    key = jax.random.PRNGKey(0)

    # NOTE: the PyTorch forward requires embedding_dim == gconv_dim (rel_aux_net is
    # declared with 2*embedding_dim+8 inputs but fed 2*gconv_dim+8 features).
    cfg = dict(
        embedding_dim=32, gconv_dim=32, gconv_hidden_dim=64,
        gconv_num_layers=3, image_size=(16, 16),
        num_objs=10, num_preds=6,
    )
    assert cfg["embedding_dim"] == cfg["gconv_dim"]

    keys = jax.random.split(key, 8)
    params = {
        "obj_emb": jax.random.normal(keys[0], (cfg["num_objs"] + 1, cfg["embedding_dim"]), jnp.float32),
        "pred_emb": jax.random.normal(keys[1], (cfg["num_preds"], cfg["embedding_dim"]), jnp.float32),
        "gconv0": init_gconv(keys[2], cfg["embedding_dim"], cfg["gconv_dim"], cfg["gconv_hidden_dim"]),
        "gconv_net": [
            init_gconv(k, cfg["gconv_dim"], cfg["gconv_dim"], cfg["gconv_hidden_dim"])
            for k in jax.random.split(keys[3], cfg["gconv_num_layers"] - 1)
        ],
        "box_net": init_mlp2(keys[4], [cfg["gconv_dim"], cfg["gconv_hidden_dim"], 4]),
        "rel_aux": init_mlp2(keys[5], [2 * cfg["embedding_dim"] + 8, cfg["gconv_hidden_dim"], cfg["num_preds"]]),
    }

    # Scene-graph inputs: O objects, T triples, N images.
    O, T, N = 8, 12, 2
    objs = jax.random.randint(keys[6], (O,), 0, cfg["num_objs"] + 1)
    ks, kp, ko = jax.random.split(keys[7], 3)
    s = jax.random.randint(ks, (T,), 0, O)
    p = jax.random.randint(kp, (T,), 0, cfg["num_preds"])
    o = jax.random.randint(ko, (T,), 0, O)
    triples = jnp.stack([s, p, o], axis=1)
    obj_to_img = jnp.array([0, 0, 0, 0, 1, 1, 1, 1], dtype=jnp.int32)

    fwd = jax.jit(functools.partial(sg2im_forward, cfg=cfg, num_images=N))
    outs = fwd(params, objs, triples, obj_to_img)
    jax.block_until_ready([x for x in outs if x is not None])

    # sanity on shapes
    boxes_pred, layout, rel_scores = outs[1], outs[4], outs[10]
    assert boxes_pred.shape == (O, 4)
    assert layout.shape == (N, cfg["gconv_dim"], cfg["image_size"][0], cfg["image_size"][1])
    assert rel_scores.shape == (T, cfg["num_preds"])
    print("KERNEL_OK")
</pallas_src>

<mosaic_0001>
module attributes {stable_mosaic.version = 11 : i64} {
  func.func @_layout_kernel(%arg0: i32, %arg1: memref<8x1xi32, #tpu.memory_space<vmem>>, %arg2: memref<8x4xf32, #tpu.memory_space<vmem>>, %arg3: memref<32x8xf32, #tpu.memory_space<vmem>>, %arg4: memref<1x32x256xf32, #tpu.memory_space<vmem>>) attributes {dimension_semantics = [#tpu.dimension_semantics<parallel>], iteration_bounds = array<i64: 2>, scalar_prefetch = 0 : i64, scratch_operands = 0 : i64, tpu.core_type = #tpu.core_type<tc>, window_params = [{pipeline_mode = #tpu.pipeline_mode<synchronous>, transform_indices = @transform_0, window_bounds = array<i64: 8, 1>}, {pipeline_mode = #tpu.pipeline_mode<synchronous>, transform_indices = @transform_1, window_bounds = array<i64: 8, 4>}, {pipeline_mode = #tpu.pipeline_mode<synchronous>, transform_indices = @transform_2, window_bounds = array<i64: 32, 8>}, {transform_indices = @transform_3, window_bounds = array<i64: 1, 32, 256>}]} {
    %c0 = arith.constant 0 : index
    %c0_0 = arith.constant 0 : index
    %0 = vector.load %arg2[%c0, %c0_0] : memref<8x4xf32, #tpu.memory_space<vmem>>, vector<8x4xf32>
    %1 = vector.extract_strided_slice %0 {offsets = [0, 0], sizes = [8, 1], strides = [1, 1]} : vector<8x4xf32> to vector<8x1xf32>
    %2 = vector.extract_strided_slice %0 {offsets = [0, 1], sizes = [8, 1], strides = [1, 1]} : vector<8x4xf32> to vector<8x1xf32>
    %3 = vector.extract_strided_slice %0 {offsets = [0, 2], sizes = [8, 1], strides = [1, 1]} : vector<8x4xf32> to vector<8x1xf32>
    %4 = vector.extract_strided_slice %0 {offsets = [0, 3], sizes = [8, 1], strides = [1, 1]} : vector<8x4xf32> to vector<8x1xf32>
    %5 = arith.subf %3, %1 : vector<8x1xf32>
    %6 = arith.subf %4, %2 : vector<8x1xf32>
    %7 = math.absf %5 : vector<8x1xf32>
    %cst = arith.constant 9.99999993E-9 : f32
    %8 = vector.broadcast %cst : f32 to vector<8x1xf32>
    %9 = arith.cmpf ogt, %7, %8 : vector<8x1xf32>
    %10 = math.absf %6 : vector<8x1xf32>
    %cst_1 = arith.constant 9.99999993E-9 : f32
    %11 = vector.broadcast %cst_1 : f32 to vector<8x1xf32>
    %12 = arith.cmpf ogt, %10, %11 : vector<8x1xf32>
    %13 = arith.andi %9, %12 : vector<8x1xi1>
    %14 = arith.extui %13 : vector<8x1xi1> to vector<8x1xi32>
    %15 = arith.sitofp %14 : vector<8x1xi32> to vector<8x1xf32>
    %16 = math.absf %5 : vector<8x1xf32>
    %cst_2 = arith.constant 9.99999993E-9 : f32
    %17 = vector.broadcast %cst_2 : f32 to vector<8x1xf32>
    %18 = arith.cmpf ogt, %16, %17 : vector<8x1xf32>
    %cst_3 = arith.constant 1.000000e+00 : f32
    %19 = vector.broadcast %cst_3 : f32 to vector<8x1xf32>
    %20 = arith.select %18, %5, %19 : vector<8x1xi1>, vector<8x1xf32>
    %cst_4 = arith.constant 1.000000e+00 : f32
    %21 = vector.broadcast %cst_4 : f32 to vector<8x1xf32>
    %22 = arith.divf %21, %20 : vector<8x1xf32>
    %23 = math.absf %6 : vector<8x1xf32>
    %cst_5 = arith.constant 9.99999993E-9 : f32
    %24 = vector.broadcast %cst_5 : f32 to vector<8x1xf32>
    %25 = arith.cmpf ogt, %23, %24 : vector<8x1xf32>
    %cst_6 = arith.constant 1.000000e+00 : f32
    %26 = vector.broadcast %cst_6 : f32 to vector<8x1xf32>
    %27 = arith.select %25, %6, %26 : vector<8x1xi1>, vector<8x1xf32>
    %cst_7 = arith.constant 1.000000e+00 : f32
    %28 = vector.broadcast %cst_7 : f32 to vector<8x1xf32>
    %29 = arith.divf %28, %27 : vector<8x1xf32>
    %30 = tpu.iota {dimensions = array<i32: 1>} : vector<8x256xi32>
    %c4_i32 = arith.constant 4 : i32
    %31 = vector.broadcast %c4_i32 : i32 to vector<8x256xi32>
    %32 = arith.shrsi %30, %31 : vector<8x256xi32>
    %c15_i32 = arith.constant 15 : i32
    %33 = vector.broadcast %c15_i32 : i32 to vector<8x256xi32>
    %34 = arith.andi %30, %33 : vector<8x256xi32>
    %35 = arith.sitofp %34 : vector<8x256xi32> to vector<8x256xf32>
    %cst_8 = arith.constant 0.0666666701 : f32
    %36 = vector.broadcast %cst_8 : f32 to vector<8x256xf32>
    %37 = arith.mulf %35, %36 : vector<8x256xf32>
    %38 = arith.sitofp %32 : vector<8x256xi32> to vector<8x256xf32>
    %cst_9 = arith.constant 0.0666666701 : f32
    %39 = vector.broadcast %cst_9 : f32 to vector<8x256xf32>
    %40 = arith.mulf %38, %39 : vector<8x256xf32>
    %41 = vector.broadcast %1 : vector<8x1xf32> to vector<8x256xf32>
    %42 = arith.subf %37, %41 : vector<8x256xf32>
    %43 = vector.broadcast %22 : vector<8x1xf32> to vector<8x256xf32>
    %44 = arith.mulf %42, %43 : vector<8x256xf32>
    %45 = vector.broadcast %2 : vector<8x1xf32> to vector<8x256xf32>
    %46 = arith.subf %40, %45 : vector<8x256xf32>
    %47 = vector.broadcast %29 : vector<8x1xf32> to vector<8x256xf32>
    %48 = arith.mulf %46, %47 : vector<8x256xf32>
    %cst_10 = arith.constant 8.000000e+00 : f32
    %49 = vector.broadcast %cst_10 : f32 to vector<8x256xf32>
    %50 = arith.mulf %44, %49 : vector<8x256xf32>
    %cst_11 = arith.constant 5.000000e-01 : f32
    %51 = vector.broadcast %cst_11 : f32 to vector<8x256xf32>
    %52 = arith.subf %50, %51 : vector<8x256xf32>
    %53 = math.floor %52 : vector<8x256xf32>
    %54 = arith.subf %52, %53 : vector<8x256xf32>
    %cst_12 = arith.constant 0.000000e+00 : f32
    %55 = vector.broadcast %cst_12 : f32 to vector<8x256xf32>
    %56 = arith.cmpf oge, %53, %55 : vector<8x256xf32>
    %cst_13 = arith.constant 7.000000e+00 : f32
    %57 = vector.broadcast %cst_13 : f32 to vector<8x256xf32>
    %58 = arith.cmpf ole, %53, %57 : vector<8x256xf32>
    %59 = arith.andi %56, %58 : vector<8x256xi1>
    %60 = arith.extui %59 : vector<8x256xi1> to vector<8x256xi32>
    %61 = arith.sitofp %60 : vector<8x256xi32> to vector<8x256xf32>
    %cst_14 = arith.constant 1.000000e+00 : f32
    %62 = vector.broadcast %cst_14 : f32 to vector<8x256xf32>
    %63 = arith.addf %53, %62 : vector<8x256xf32>
    %cst_15 = arith.constant 0.000000e+00 : f32
    %64 = vector.broadcast %cst_15 : f32 to vector<8x256xf32>
    %65 = arith.cmpf oge, %63, %64 : vector<8x256xf32>
    %cst_16 = arith.constant 1.000000e+00 : f32
    %66 = vector.broadcast %cst_16 : f32 to vector<8x256xf32>
    %67 = arith.addf %53, %66 : vector<8x256xf32>
    %cst_17 = arith.constant 7.000000e+00 : f32
    %68 = vector.broadcast %cst_17 : f32 to vector<8x256xf32>
    %69 = arith.cmpf ole, %67, %68 : vector<8x256xf32>
    %70 = arith.andi %65, %69 : vector<8x256xi1>
    %71 = arith.extui %70 : vector<8x256xi1> to vector<8x256xi32>
    %72 = arith.sitofp %71 : vector<8x256xi32> to vector<8x256xf32>
    %cst_18 = arith.constant 1.000000e+00 : f32
    %73 = vector.broadcast %cst_18 : f32 to vector<8x256xf32>
    %74 = arith.subf %73, %54 : vector<8x256xf32>
    %75 = arith.mulf %74, %61 : vector<8x256xf32>
    %76 = arith.mulf %54, %72 : vector<8x256xf32>
    %77 = arith.addf %75, %76 : vector<8x256xf32>
    %cst_19 = arith.constant 8.000000e+00 : f32
    %78 = vector.broadcast %cst_19 : f32 to vector<8x256xf32>
    %79 = arith.mulf %48, %78 : vector<8x256xf32>
    %cst_20 = arith.constant 5.000000e-01 : f32
    %80 = vector.broadcast %cst_20 : f32 to vector<8x256xf32>
    %81 = arith.subf %79, %80 : vector<8x256xf32>
    %82 = math.floor %81 : vector<8x256xf32>
    %83 = arith.subf %81, %82 : vector<8x256xf32>
    %cst_21 = arith.constant 0.000000e+00 : f32
    %84 = vector.broadcast %cst_21 : f32 to vector<8x256xf32>
    %85 = arith.cmpf oge, %82, %84 : vector<8x256xf32>
    %cst_22 = arith.constant 7.000000e+00 : f32
    %86 = vector.broadcast %cst_22 : f32 to vector<8x256xf32>
    %87 = arith.cmpf ole, %82, %86 : vector<8x256xf32>
    %88 = arith.andi %85, %87 : vector<8x256xi1>
    %89 = arith.extui %88 : vector<8x256xi1> to vector<8x256xi32>
    %90 = arith.sitofp %89 : vector<8x256xi32> to vector<8x256xf32>
    %cst_23 = arith.constant 1.000000e+00 : f32
    %91 = vector.broadcast %cst_23 : f32 to vector<8x256xf32>
    %92 = arith.addf %82, %91 : vector<8x256xf32>
    %cst_24 = arith.constant 0.000000e+00 : f32
    %93 = vector.broadcast %cst_24 : f32 to vector<8x256xf32>
    %94 = arith.cmpf oge, %92, %93 : vector<8x256xf32>
    %cst_25 = arith.constant 1.000000e+00 : f32
    %95 = vector.broadcast %cst_25 : f32 to vector<8x256xf32>
    %96 = arith.addf %82, %95 : vector<8x256xf32>
    %cst_26 = arith.constant 7.000000e+00 : f32
    %97 = vector.broadcast %cst_26 : f32 to vector<8x256xf32>
    %98 = arith.cmpf ole, %96, %97 : vector<8x256xf32>
    %99 = arith.andi %94, %98 : vector<8x256xi1>
    %100 = arith.extui %99 : vector<8x256xi1> to vector<8x256xi32>
    %101 = arith.sitofp %100 : vector<8x256xi32> to vector<8x256xf32>
    %cst_27 = arith.constant 1.000000e+00 : f32
    %102 = vector.broadcast %cst_27 : f32 to vector<8x256xf32>
    %103 = arith.subf %102, %83 : vector<8x256xf32>
    %104 = arith.mulf %103, %90 : vector<8x256xf32>
    %105 = arith.mulf %83, %101 : vector<8x256xf32>
    %106 = arith.addf %104, %105 : vector<8x256xf32>
    %107 = arith.mulf %77, %106 : vector<8x256xf32>
    %c0_28 = arith.constant 0 : index
    %c0_29 = arith.constant 0 : index
    %108 = vector.load %arg1[%c0_28, %c0_29] : memref<8x1xi32, #tpu.memory_space<vmem>>, vector<8x1xi32>
    %109 = vector.broadcast %arg0 : i32 to vector<8x1xi32>
    %110 = arith.cmpi eq, %108, %109 : vector<8x1xi32>
    %111 = arith.extui %110 : vector<8x1xi1> to vector<8x1xi32>
    %112 = arith.sitofp %111 : vector<8x1xi32> to vector<8x1xf32>
    %113 = arith.mulf %112, %15 : vector<8x1xf32>
    %114 = vector.broadcast %113 : vector<8x1xf32> to vector<8x256xf32>
    %115 = arith.mulf %107, %114 : vector<8x256xf32>
    %c0_30 = arith.constant 0 : index
    %c0_31 = arith.constant 0 : index
    %116 = vector.load %arg3[%c0_30, %c0_31] : memref<32x8xf32, #tpu.memory_space<vmem>>, vector<32x8xf32>
    %cst_32 = arith.constant dense<0.000000e+00> : vector<32x256xf32>
    %117 = tpu.matmul %116, %115, %cst_32 {dimension_numbers = #tpu.dot_dimension_numbers<[1], [0], [0], [1], [0, 0, 1, 1], [], []>} : vector<32x8xf32>, vector<8x256xf32>, vector<32x256xf32> -> vector<32x256xf32>
    %118 = vector.shape_cast %117 : vector<32x256xf32> to vector<1x32x256xf32>
    %c0_33 = arith.constant 0 : index
    %c0_34 = arith.constant 0 : index
    %c0_35 = arith.constant 0 : index
    %119 = vector.load %arg4[%c0_33, %c0_34, %c0_35] : memref<1x32x256xf32, #tpu.memory_space<vmem>>, vector<1x32x256xf32>
    tpu.vector_store %arg4[%c0_33, %c0_34, %c0_35], %118 {strides = array<i32>} : memref<1x32x256xf32, #tpu.memory_space<vmem>>, vector<1x32x256xf32>,
    return
  }
  func.func @transform_0(%arg0: i32) -> (i32, i32) {
    %c0_i32 = arith.constant 0 : i32
    %c0_i32_0 = arith.constant 0 : i32
    %c0_i32_1 = arith.constant 0 : i32
    return %c0_i32, %c0_i32_0 : i32, i32
  }
  func.func @transform_1(%arg0: i32) -> (i32, i32) {
    %c0_i32 = arith.constant 0 : i32
    %c0_i32_0 = arith.constant 0 : i32
    %c0_i32_1 = arith.constant 0 : i32
    return %c0_i32, %c0_i32_0 : i32, i32
  }
  func.func @transform_2(%arg0: i32) -> (i32, i32) {
    %c0_i32 = arith.constant 0 : i32
    %c0_i32_0 = arith.constant 0 : i32
    %c0_i32_1 = arith.constant 0 : i32
    return %c0_i32, %c0_i32_0 : i32, i32
  }
  func.func @transform_3(%arg0: i32) -> (i32, i32, i32) {
    %c0_i32 = arith.constant 0 : i32
    %c0_i32_0 = arith.constant 0 : i32
    %c0_i32_1 = arith.constant 0 : i32
    return %arg0, %c0_i32, %c0_i32_0 : i32, i32, i32
  }
}

module attributes {stable_mosaic.version = 11 : i64} {
  func.func @_fused_graph_kernel(%arg0: i32, %arg1: memref<8x32xf32, #tpu.memory_space<vmem>>, %arg2: memref<12x32xf32, #tpu.memory_space<vmem>>, %arg3: memref<12x1xi32, #tpu.memory_space<vmem>>, %arg4: memref<12x1xi32, #tpu.memory_space<vmem>>, %arg5: memref<1x12xi32, #tpu.memory_space<vmem>>, %arg6: memref<1x12xi32, #tpu.memory_space<vmem>>, %arg7: memref<8x1xf32, #tpu.memory_space<vmem>>, %arg8: memref<1x32x64xf32, #tpu.memory_space<vmem>>, %arg9: memref<1x32x64xf32, #tpu.memory_space<vmem>>, %arg10: memref<1x32x64xf32, #tpu.memory_space<vmem>>, %arg11: memref<1x1x64xf32, #tpu.memory_space<vmem>>, %arg12: memref<1x64x64xf32, #tpu.memory_space<vmem>>, %arg13: memref<1x1x64xf32, #tpu.memory_space<vmem>>, %arg14: memref<1x64x32xf32, #tpu.memory_space<vmem>>, %arg15: memref<1x1x32xf32, #tpu.memory_space<vmem>>, %arg16: memref<1x64x64xf32, #tpu.memory_space<vmem>>, %arg17: memref<1x1x64xf32, #tpu.memory_space<vmem>>, %arg18: memref<1x64x64xf32, #tpu.memory_space<vmem>>, %arg19: memref<1x1x64xf32, #tpu.memory_space<vmem>>, %arg20: memref<1x64x32xf32, #tpu.memory_space<vmem>>, %arg21: memref<1x1x32xf32, #tpu.memory_space<vmem>>, %arg22: memref<32x64xf32, #tpu.memory_space<vmem>>, %arg23: memref<1x64xf32, #tpu.memory_space<vmem>>, %arg24: memref<64x128xf32, #tpu.memory_space<vmem>>, %arg25: memref<1x128xf32, #tpu.memory_space<vmem>>, %arg26: memref<128x64xf32, #tpu.memory_space<vmem>>, %arg27: memref<128x64xf32, #tpu.memory_space<vmem>>, %arg28: memref<32x64xf32, #tpu.memory_space<vmem>>, %arg29: memref<32x64xf32, #tpu.memory_space<vmem>>, %arg30: memref<1x64xf32, #tpu.memory_space<vmem>>, %arg31: memref<64x128xf32, #tpu.memory_space<vmem>>, %arg32: memref<1x128xf32, #tpu.memory_space<vmem>>, %arg33: memref<8x32xf32, #tpu.memory_space<vmem>>, %arg34: memref<12x32xf32, #tpu.memory_space<vmem>>, %arg35: memref<8x128xf32, #tpu.memory_space<vmem>>, %arg36: memref<12x128xf32, #tpu.memory_space<vmem>>, %arg37: memref<8x32xf32, #tpu.memory_space<vmem>>, %arg38: memref<12x32xf32, #tpu.memory_space<vmem>>) attributes {dimension_semantics = [#tpu.dimension_semantics<arbitrary>], iteration_bounds = array<i64: 3>, scalar_prefetch = 0 : i64, scratch_operands = 2 : i64, tpu.core_type = #tpu.core_type<tc>, window_params = [{pipeline_mode = #tpu.pipeline_mode<synchronous>, transform_indices = @transform_0, window_bounds = array<i64: 8, 32>}, {pipeline_mode = #tpu.pipeline_mode<synchronous>, transform_indices = @transform_1, window_bounds = array<i64: 12, 32>}, {pipeline_mode = #tpu.pipeline_mode<synchronous>, transform_indices = @transform_2, window_bounds = array<i64: 12, 1>}, {pipeline_mode = #tpu.pipeline_mode<synchronous>, transform_indices = @transform_3, window_bounds = array<i64: 12, 1>}, {pipeline_mode = #tpu.pipeline_mode<synchronous>, transform_indices = @transform_4, window_bounds = array<i64: 1, 12>}, {pipeline_mode = #tpu.pipeline_mode<synchronous>, transform_indices = @transform_5, window_bounds = array<i64: 1, 12>}, {pipeline_mode = #tpu.pipeline_mode<synchronous>, transform_indices = @transform_6, window_bounds = array<i64: 8, 1>}, {transform_indices = @transform_7, window_bounds = array<i64: 1, 32, 64>}, {transform_indices = @transform_8, window_bounds = array<i64: 1, 32, 64>}, {transform_indices = @transform_9, window_bounds = array<i64: 1, 32, 64>}, {transform_indices = @transform_10, window_bounds = array<i64: 1, 1, 64>}, {transform_indices = @transform_11, window_bounds = array<i64: 1, 64, 64>}, {transform_indices = @transform_12, window_bounds = array<i64: 1, 1, 64>}, {transform_indices = @transform_13, window_bounds = array<i64: 1, 64, 32>}, {transform_indices = @transform_14, window_bounds = array<i64: 1, 1, 32>}, {transform_indices = @transform_15, window_bounds = array<i64: 1, 64, 64>}, {transform_indices = @transform_16, window_bounds = array<i64: 1, 1, 64>}, {transform_indices = @transform_17, window_bounds = array<i64: 1, 64, 64>}, {transform_indices = @transform_18, window_bounds = array<i64: 1, 1, 64>}, {transform_indices = @transform_19, window_bounds = array<i64: 1, 64, 32>}, {transform_indices = @transform_20, window_bounds = array<i64: 1, 1, 32>}, {pipeline_mode = #tpu.pipeline_mode<synchronous>, transform_indices = @transform_21, window_bounds = array<i64: 32, 64>}, {pipeline_mode = #tpu.pipeline_mode<synchronous>, transform_indices = @transform_22, window_bounds = array<i64: 1, 64>}, {pipeline_mode = #tpu.pipeline_mode<synchronous>, transform_indices = @transform_23, window_bounds = array<i64: 64, 128>}, {pipeline_mode = #tpu.pipeline_mode<synchronous>, transform_indices = @transform_24, window_bounds = array<i64: 1, 128>}, {pipeline_mode = #tpu.pipeline_mode<synchronous>, transform_indices = @transform_25, window_bounds = array<i64: 128, 64>}, {pipeline_mode = #tpu.pipeline_mode<synchronous>, transform_indices = @transform_26, window_bounds = array<i64: 128, 64>}, {pipeline_mode = #tpu.pipeline_mode<synchronous>, transform_indices = @transform_27, window_bounds = array<i64: 32, 64>}, {pipeline_mode = #tpu.pipeline_mode<synchronous>, transform_indices = @transform_28, window_bounds = array<i64: 32, 64>}, {pipeline_mode = #tpu.pipeline_mode<synchronous>, transform_indices = @transform_29, window_bounds = array<i64: 1, 64>}, {pipeline_mode = #tpu.pipeline_mode<synchronous>, transform_indices = @transform_30, window_bounds = array<i64: 64, 128>}, {pipeline_mode = #tpu.pipeline_mode<synchronous>, transform_indices = @transform_31, window_bounds = array<i64: 1, 128>}, {pipeline_mode = #tpu.pipeline_mode<synchronous>, transform_indices = @transform_32, window_bounds = array<i64: 8, 32>}, {pipeline_mode = #tpu.pipeline_mode<synchronous>, transform_indices = @transform_33, window_bounds = array<i64: 12, 32>}, {pipeline_mode = #tpu.pipeline_mode<synchronous>, transform_indices = @transform_34, window_bounds = array<i64: 8, 128>}, {pipeline_mode = #tpu.pipeline_mode<synchronous>, transform_indices = @transform_35, window_bounds = array<i64: 12, 128>}]} {
    %c0_i32 = arith.constant 0 : i32
    %0 = arith.cmpi eq, %arg0, %c0_i32 : i32
    %1 = arith.extui %0 : i1 to i32
    %c0_i32_0 = arith.constant 0 : i32
    %2 = arith.cmpi ne, %1, %c0_i32_0 : i32
    scf.if %2 {
      %c0_82 = arith.constant 0 : index
      %c0_83 = arith.constant 0 : index
      %106 = vector.load %arg1[%c0_82, %c0_83] : memref<8x32xf32, #tpu.memory_space<vmem>>, vector<8x32xf32>
      %c0_84 = arith.constant 0 : index
      %c0_85 = arith.constant 0 : index
      %107 = vector.load %arg37[%c0_84, %c0_85] : memref<8x32xf32, #tpu.memory_space<vmem>>, vector<8x32xf32>
      tpu.vector_store %arg37[%c0_84, %c0_85], %106 {strides = array<i32>} : memref<8x32xf32, #tpu.memory_space<vmem>>, vector<8x32xf32>,
      %c0_86 = arith.constant 0 : index
      %c0_87 = arith.constant 0 : index
      %108 = vector.load %arg2[%c0_86, %c0_87] : memref<12x32xf32, #tpu.memory_space<vmem>>, vector<12x32xf32>
      %c0_88 = arith.constant 0 : index
      %c0_89 = arith.constant 0 : index
      %109 = vector.load %arg38[%c0_88, %c0_89] : memref<12x32xf32, #tpu.memory_space<vmem>>, vector<12x32xf32>
      tpu.vector_store %arg38[%c0_88, %c0_89], %108 {strides = array<i32>} : memref<12x32xf32, #tpu.memory_space<vmem>>, vector<12x32xf32>,
    } else {
    }
    %c0 = arith.constant 0 : index
    %c0_1 = arith.constant 0 : index
    %3 = vector.load %arg37[%c0, %c0_1] : memref<8x32xf32, #tpu.memory_space<vmem>>, vector<8x32xf32>
    %c0_2 = arith.constant 0 : index
    %c0_3 = arith.constant 0 : index
    %4 = vector.load %arg38[%c0_2, %c0_3] : memref<12x32xf32, #tpu.memory_space<vmem>>, vector<12x32xf32>
    %c0_4 = arith.constant 0 : index
    %c0_5 = arith.constant 0 : index
    %5 = vector.load %arg3[%c0_4, %c0_5] : memref<12x1xi32, #tpu.memory_space<vmem>>, vector<12x1xi32>
    %6 = tpu.iota {dimensions = array<i32: 1>} : vector<12x8xi32>
    %7 = vector.broadcast %5 : vector<12x1xi32> to vector<12x8xi32>
    %8 = arith.cmpi eq, %7, %6 : vector<12x8xi32>
    %9 = arith.extui %8 : vector<12x8xi1> to vector<12x8xi32>
    %10 = arith.sitofp %9 : vector<12x8xi32> to vector<12x8xf32>
    %c0_6 = arith.constant 0 : index
    %c0_7 = arith.constant 0 : index
    %11 = vector.load %arg4[%c0_6, %c0_7] : memref<12x1xi32, #tpu.memory_space<vmem>>, vector<12x1xi32>
    %12 = tpu.iota {dimensions = array<i32: 1>} : vector<12x8xi32>
    %13 = vector.broadcast %11 : vector<12x1xi32> to vector<12x8xi32>
    %14 = arith.cmpi eq, %13, %12 : vector<12x8xi32>
    %15 = arith.extui %14 : vector<12x8xi1> to vector<12x8xi32>
    %16 = arith.sitofp %15 : vector<12x8xi32> to vector<12x8xf32>
    %c0_8 = arith.constant 0 : index
    %c0_9 = arith.constant 0 : index
    %17 = vector.load %arg5[%c0_8, %c0_9] : memref<1x12xi32, #tpu.memory_space<vmem>>, vector<1x12xi32>
    %18 = tpu.iota {dimensions = array<i32: 0>} : vector<8x12xi32>
    %19 = vector.broadcast %17 : vector<1x12xi32> to vector<8x12xi32>
    %20 = arith.cmpi eq, %19, %18 : vector<8x12xi32>
    %21 = arith.extui %20 : vector<8x12xi1> to vector<8x12xi32>
    %22 = arith.sitofp %21 : vector<8x12xi32> to vector<8x12xf32>
    %c0_10 = arith.constant 0 : index
    %c0_11 = arith.constant 0 : index
    %23 = vector.load %arg6[%c0_10, %c0_11] : memref<1x12xi32, #tpu.memory_space<vmem>>, vector<1x12xi32>
    %24 = tpu.iota {dimensions = array<i32: 0>} : vector<8x12xi32>
    %25 = vector.broadcast %23 : vector<1x12xi32> to vector<8x12xi32>
    %26 = arith.cmpi eq, %25, %24 : vector<8x12xi32>
    %27 = arith.extui %26 : vector<8x12xi1> to vector<8x12xi32>
    %28 = arith.sitofp %27 : vector<8x12xi32> to vector<8x12xf32>
    %cst = arith.constant dense<0.000000e+00> : vector<12x32xf32>
    %29 = tpu.matmul %10, %3, %cst {dimension_numbers = #tpu.dot_dimension_numbers<[1], [0], [0], [1], [0, 0, 1, 1], [], []>} : vector<12x8xf32>, vector<8x32xf32>, vector<12x32xf32> -> vector<12x32xf32>
    %cst_12 = arith.constant dense<0.000000e+00> : vector<12x32xf32>
    %30 = tpu.matmul %16, %3, %cst_12 {dimension_numbers = #tpu.dot_dimension_numbers<[1], [0], [0], [1], [0, 0, 1, 1], [], []>} : vector<12x8xf32>, vector<8x32xf32>, vector<12x32xf32> -> vector<12x32xf32>
    %c0_13 = arith.constant 0 : index
    %c0_14 = arith.constant 0 : index
    %c0_15 = arith.constant 0 : index
    %31 = vector.load %arg8[%c0_13, %c0_14, %c0_15] : memref<1x32x64xf32, #tpu.memory_space<vmem>>, vector<1x32x64xf32>
    %32 = vector.shape_cast %31 : vector<1x32x64xf32> to vector<32x64xf32>
    %cst_16 = arith.constant dense<0.000000e+00> : vector<12x64xf32>
    %33 = tpu.matmul %29, %32, %cst_16 {dimension_numbers = #tpu.dot_dimension_numbers<[1], [0], [0], [1], [0, 0, 1, 1], [], []>} : vector<12x32xf32>, vector<32x64xf32>, vector<12x64xf32> -> vector<12x64xf32>
    %c0_17 = arith.constant 0 : index
    %c0_18 = arith.constant 0 : index
    %c0_19 = arith.constant 0 : index
    %34 = vector.load %arg9[%c0_17, %c0_18, %c0_19] : memref<1x32x64xf32, #tpu.memory_space<vmem>>, vector<1x32x64xf32>
    %35 = vector.shape_cast %34 : vector<1x32x64xf32> to vector<32x64xf32>
    %cst_20 = arith.constant dense<0.000000e+00> : vector<12x64xf32>
    %36 = tpu.matmul %4, %35, %cst_20 {dimension_numbers = #tpu.dot_dimension_numbers<[1], [0], [0], [1], [0, 0, 1, 1], [], []>} : vector<12x32xf32>, vector<32x64xf32>, vector<12x64xf32> -> vector<12x64xf32>
    %37 = arith.addf %33, %36 : vector<12x64xf32>
    %c0_21 = arith.constant 0 : index
    %c0_22 = arith.constant 0 : index
    %c0_23 = arith.constant 0 : index
    %38 = vector.load %arg10[%c0_21, %c0_22, %c0_23] : memref<1x32x64xf32, #tpu.memory_space<vmem>>, vector<1x32x64xf32>
    %39 = vector.shape_cast %38 : vector<1x32x64xf32> to vector<32x64xf32>
    %cst_24 = arith.constant dense<0.000000e+00> : vector<12x64xf32>
    %40 = tpu.matmul %30, %39, %cst_24 {dimension_numbers = #tpu.dot_dimension_numbers<[1], [0], [0], [1], [0, 0, 1, 1], [], []>} : vector<12x32xf32>, vector<32x64xf32>, vector<12x64xf32> -> vector<12x64xf32>
    %41 = arith.addf %37, %40 : vector<12x64xf32>
    %c0_25 = arith.constant 0 : index
    %c0_26 = arith.constant 0 : index
    %c0_27 = arith.constant 0 : index
    %42 = vector.load %arg11[%c0_25, %c0_26, %c0_27] : memref<1x1x64xf32, #tpu.memory_space<vmem>>, vector<1x1x64xf32>
    %43 = vector.shape_cast %42 : vector<1x1x64xf32> to vector<1x64xf32>
    %44 = vector.broadcast %43 : vector<1x64xf32> to vector<12x64xf32>
    %45 = arith.addf %41, %44 : vector<12x64xf32>
    %cst_28 = arith.constant 0.000000e+00 : f32
    %46 = vector.broadcast %cst_28 : f32 to vector<12x64xf32>
    %47 = arith.maximumf %45, %46 : vector<12x64xf32>
    %c0_29 = arith.constant 0 : index
    %c0_30 = arith.constant 0 : index
    %c0_31 = arith.constant 0 : index
    %48 = vector.load %arg12[%c0_29, %c0_30, %c0_31] : memref<1x64x64xf32, #tpu.memory_space<vmem>>, vector<1x64x64xf32>
    %49 = vector.shape_cast %48 : vector<1x64x64xf32> to vector<64x64xf32>
    %cst_32 = arith.constant dense<0.000000e+00> : vector<12x64xf32>
    %50 = tpu.matmul %47, %49, %cst_32 {dimension_numbers = #tpu.dot_dimension_numbers<[1], [0], [0], [1], [0, 0, 1, 1], [], []>} : vector<12x64xf32>, vector<64x64xf32>, vector<12x64xf32> -> vector<12x64xf32>
    %c0_33 = arith.constant 0 : index
    %c0_34 = arith.constant 0 : index
    %c0_35 = arith.constant 0 : index
    %51 = vector.load %arg13[%c0_33, %c0_34, %c0_35] : memref<1x1x64xf32, #tpu.memory_space<vmem>>, vector<1x1x64xf32>
    %52 = vector.shape_cast %51 : vector<1x1x64xf32> to vector<1x64xf32>
    %53 = vector.broadcast %52 : vector<1x64xf32> to vector<12x64xf32>
    %54 = arith.addf %50, %53 : vector<12x64xf32>
    %cst_36 = arith.constant 0.000000e+00 : f32
    %55 = vector.broadcast %cst_36 : f32 to vector<12x64xf32>
    %56 = arith.maximumf %54, %55 : vector<12x64xf32>
    %c0_37 = arith.constant 0 : index
    %c0_38 = arith.constant 0 : index
    %c0_39 = arith.constant 0 : index
    %57 = vector.load %arg14[%c0_37, %c0_38, %c0_39] : memref<1x64x32xf32, #tpu.memory_space<vmem>>, vector<1x64x32xf32>
    %58 = vector.shape_cast %57 : vector<1x64x32xf32> to vector<64x32xf32>
    %cst_40 = arith.constant dense<0.000000e+00> : vector<12x32xf32>
    %59 = tpu.matmul %47, %58, %cst_40 {dimension_numbers = #tpu.dot_dimension_numbers<[1], [0], [0], [1], [0, 0, 1, 1], [], []>} : vector<12x64xf32>, vector<64x32xf32>, vector<12x32xf32> -> vector<12x32xf32>
    %c0_41 = arith.constant 0 : index
    %c0_42 = arith.constant 0 : index
    %c0_43 = arith.constant 0 : index
    %60 = vector.load %arg15[%c0_41, %c0_42, %c0_43] : memref<1x1x32xf32, #tpu.memory_space<vmem>>, vector<1x1x32xf32>
    %61 = vector.shape_cast %60 : vector<1x1x32xf32> to vector<1x32xf32>
    %62 = vector.broadcast %61 : vector<1x32xf32> to vector<12x32xf32>
    %63 = arith.addf %59, %62 : vector<12x32xf32>
    %cst_44 = arith.constant 0.000000e+00 : f32
    %64 = vector.broadcast %cst_44 : f32 to vector<12x32xf32>
    %65 = arith.maximumf %63, %64 : vector<12x32xf32>
    %c0_45 = arith.constant 0 : index
    %c0_46 = arith.constant 0 : index
    %c0_47 = arith.constant 0 : index
    %66 = vector.load %arg16[%c0_45, %c0_46, %c0_47] : memref<1x64x64xf32, #tpu.memory_space<vmem>>, vector<1x64x64xf32>
    %67 = vector.shape_cast %66 : vector<1x64x64xf32> to vector<64x64xf32>
    %cst_48 = arith.constant dense<0.000000e+00> : vector<12x64xf32>
    %68 = tpu.matmul %47, %67, %cst_48 {dimension_numbers = #tpu.dot_dimension_numbers<[1], [0], [0], [1], [0, 0, 1, 1], [], []>} : vector<12x64xf32>, vector<64x64xf32>, vector<12x64xf32> -> vector<12x64xf32>
    %c0_49 = arith.constant 0 : index
    %c0_50 = arith.constant 0 : index
    %c0_51 = arith.constant 0 : index
    %69 = vector.load %arg17[%c0_49, %c0_50, %c0_51] : memref<1x1x64xf32, #tpu.memory_space<vmem>>, vector<1x1x64xf32>
    %70 = vector.shape_cast %69 : vector<1x1x64xf32> to vector<1x64xf32>
    %71 = vector.broadcast %70 : vector<1x64xf32> to vector<12x64xf32>
    %72 = arith.addf %68, %71 : vector<12x64xf32>
    %cst_52 = arith.constant 0.000000e+00 : f32
    %73 = vector.broadcast %cst_52 : f32 to vector<12x64xf32>
    %74 = arith.maximumf %72, %73 : vector<12x64xf32>
    %cst_53 = arith.constant dense<0.000000e+00> : vector<8x64xf32>
    %75 = tpu.matmul %22, %56, %cst_53 {dimension_numbers = #tpu.dot_dimension_numbers<[1], [0], [0], [1], [0, 0, 1, 1], [], []>} : vector<8x12xf32>, vector<12x64xf32>, vector<8x64xf32> -> vector<8x64xf32>
    %cst_54 = arith.constant dense<0.000000e+00> : vector<8x64xf32>
    %76 = tpu.matmul %28, %74, %cst_54 {dimension_numbers = #tpu.dot_dimension_numbers<[1], [0], [0], [1], [0, 0, 1, 1], [], []>} : vector<8x12xf32>, vector<12x64xf32>, vector<8x64xf32> -> vector<8x64xf32>
    %77 = arith.addf %75, %76 : vector<8x64xf32>
    %c0_55 = arith.constant 0 : index
    %c0_56 = arith.constant 0 : index
    %78 = vector.load %arg7[%c0_55, %c0_56] : memref<8x1xf32, #tpu.memory_space<vmem>>, vector<8x1xf32>
    %79 = vector.broadcast %78 : vector<8x1xf32> to vector<8x64xf32>
    %80 = arith.mulf %77, %79 : vector<8x64xf32>
    %c0_57 = arith.constant 0 : index
    %c0_58 = arith.constant 0 : index
    %c0_59 = arith.constant 0 : index
    %81 = vector.load %arg18[%c0_57, %c0_58, %c0_59] : memref<1x64x64xf32, #tpu.memory_space<vmem>>, vector<1x64x64xf32>
    %82 = vector.shape_cast %81 : vector<1x64x64xf32> to vector<64x64xf32>
    %cst_60 = arith.constant dense<0.000000e+00> : vector<8x64xf32>
    %83 = tpu.matmul %80, %82, %cst_60 {dimension_numbers = #tpu.dot_dimension_numbers<[1], [0], [0], [1], [0, 0, 1, 1], [], []>} : vector<8x64xf32>, vector<64x64xf32>, vector<8x64xf32> -> vector<8x64xf32>
    %c0_61 = arith.constant 0 : index
    %c0_62 = arith.constant 0 : index
    %c0_63 = arith.constant 0 : index
    %84 = vector.load %arg19[%c0_61, %c0_62, %c0_63] : memref<1x1x64xf32, #tpu.memory_space<vmem>>, vector<1x1x64xf32>
    %85 = vector.shape_cast %84 : vector<1x1x64xf32> to vector<1x64xf32>
    %86 = vector.broadcast %85 : vector<1x64xf32> to vector<8x64xf32>
    %87 = arith.addf %83, %86 : vector<8x64xf32>
    %cst_64 = arith.constant 0.000000e+00 : f32
    %88 = vector.broadcast %cst_64 : f32 to vector<8x64xf32>
    %89 = arith.maximumf %87, %88 : vector<8x64xf32>
    %c0_65 = arith.constant 0 : index
    %c0_66 = arith.constant 0 : index
    %c0_67 = arith.constant 0 : index
    %90 = vector.load %arg20[%c0_65, %c0_66, %c0_67] : memref<1x64x32xf32, #tpu.memory_space<vmem>>, vector<1x64x32xf32>
    %91 = vector.shape_cast %90 : vector<1x64x32xf32> to vector<64x32xf32>
    %cst_68 = arith.constant dense<0.000000e+00> : vector<8x32xf32>
    %92 = tpu.matmul %89, %91, %cst_68 {dimension_numbers = #tpu.dot_dimension_numbers<[1], [0], [0], [1], [0, 0, 1, 1], [], []>} : vector<8x64xf32>, vector<64x32xf32>, vector<8x32xf32> -> vector<8x32xf32>
    %c0_69 = arith.constant 0 : index
    %c0_70 = arith.constant 0 : index
    %c0_71 = arith.constant 0 : index
    %93 = vector.load %arg21[%c0_69, %c0_70, %c0_71] : memref<1x1x32xf32, #tpu.memory_space<vmem>>, vector<1x1x32xf32>
    %94 = vector.shape_cast %93 : vector<1x1x32xf32> to vector<1x32xf32>
    %95 = vector.broadcast %94 : vector<1x32xf32> to vector<8x32xf32>
    %96 = arith.addf %92, %95 : vector<8x32xf32>
    %cst_72 = arith.constant 0.000000e+00 : f32
    %97 = vector.broadcast %cst_72 : f32 to vector<8x32xf32>
    %98 = arith.maximumf %96, %97 : vector<8x32xf32>
    %c0_73 = arith.constant 0 : index
    %c0_74 = arith.constant 0 : index
    %99 = vector.load %arg37[%c0_73, %c0_74] : memref<8x32xf32, #tpu.memory_space<vmem>>, vector<8x32xf32>
    tpu.vector_store %arg37[%c0_73, %c0_74], %98 {strides = array<i32>} : memref<8x32xf32, #tpu.memory_space<vmem>>, vector<8x32xf32>,
    %c0_75 = arith.constant 0 : index
    %c0_76 = arith.constant 0 : index
    %100 = vector.load %arg38[%c0_75, %c0_76] : memref<12x32xf32, #tpu.memory_space<vmem>>, vector<12x32xf32>
    tpu.vector_store %arg38[%c0_75, %c0_76], %65 {strides = array<i32>} : memref<12x32xf32, #tpu.memory_space<vmem>>, vector<12x32xf32>,
    %c0_77 = arith.constant 0 : index
    %c0_78 = arith.constant 0 : index
    %101 = vector.load %arg33[%c0_77, %c0_78] : memref<8x32xf32, #tpu.memory_space<vmem>>, vector<8x32xf32>
    tpu.vector_store %arg33[%c0_77, %c0_78], %98 {strides = array<i32>} : memref<8x32xf32, #tpu.memory_space<vmem>>, vector<8x32xf32>,
    %c0_79 = arith.constant 0 : index
    %c0_80 = arith.constant 0 : index
    %102 = vector.load %arg34[%c0_79, %c0_80] : memref<12x32xf32, #tpu.memory_space<vmem>>, vector<12x32xf32>
    tpu.vector_store %arg34[%c0_79, %c0_80], %65 {strides = array<i32>} : memref<12x32xf32, #tpu.memory_space<vmem>>, vector<12x32xf32>,
    %c2_i32 = arith.constant 2 : i32
    %103 = arith.cmpi eq, %arg0, %c2_i32 : i32
    %104 = arith.extui %103 : i1 to i32
    %c0_i32_81 = arith.constant 0 : i32
    %105 = arith.cmpi ne, %104, %c0_i32_81 : i32
    scf.if %105 {
      %c0_82 = arith.constant 0 : index
      %c0_83 = arith.constant 0 : index
      %106 = vector.load %arg22[%c0_82, %c0_83] : memref<32x64xf32, #tpu.memory_space<vmem>>, vector<32x64xf32>
      %cst_84 = arith.constant dense<0.000000e+00> : vector<8x64xf32>
      %107 = tpu.matmul %98, %106, %cst_84 {dimension_numbers = #tpu.dot_dimension_numbers<[1], [0], [0], [1], [0, 0, 1, 1], [], []>} : vector<8x32xf32>, vector<32x64xf32>, vector<8x64xf32> -> vector<8x64xf32>
      %c0_85 = arith.constant 0 : index
      %c0_86 = arith.constant 0 : index
      %108 = vector.load %arg23[%c0_85, %c0_86] : memref<1x64xf32, #tpu.memory_space<vmem>>, vector<1x64xf32>
      %109 = vector.broadcast %108 : vector<1x64xf32> to vector<8x64xf32>
      %110 = arith.addf %107, %109 : vector<8x64xf32>
      %cst_87 = arith.constant 0.000000e+00 : f32
      %111 = vector.broadcast %cst_87 : f32 to vector<8x64xf32>
      %112 = arith.maximumf %110, %111 : vector<8x64xf32>
      %c0_88 = arith.constant 0 : index
      %c0_89 = arith.constant 0 : index
      %113 = vector.load %arg24[%c0_88, %c0_89] : memref<64x128xf32, #tpu.memory_space<vmem>>, vector<64x128xf32>
      %cst_90 = arith.constant dense<0.000000e+00> : vector<8x128xf32>
      %114 = tpu.matmul %112, %113, %cst_90 {dimension_numbers = #tpu.dot_dimension_numbers<[1], [0], [0], [1], [0, 0, 1, 1], [], []>} : vector<8x64xf32>, vector<64x128xf32>, vector<8x128xf32> -> vector<8x128xf32>
      %c0_91 = arith.constant 0 : index
      %c0_92 = arith.constant 0 : index
      %115 = vector.load %arg25[%c0_91, %c0_92] : memref<1x128xf32, #tpu.memory_space<vmem>>, vector<1x128xf32>
      %116 = vector.broadcast %115 : vector<1x128xf32> to vector<8x128xf32>
      %117 = arith.addf %114, %116 : vector<8x128xf32>
      %cst_93 = arith.constant 0.000000e+00 : f32
      %118 = vector.broadcast %cst_93 : f32 to vector<8x128xf32>
      %119 = arith.maximumf %117, %118 : vector<8x128xf32>
      %c0_94 = arith.constant 0 : index
      %c0_95 = arith.constant 0 : index
      %120 = vector.load %arg35[%c0_94, %c0_95] : memref<8x128xf32, #tpu.memory_space<vmem>>, vector<8x128xf32>
      tpu.vector_store %arg35[%c0_94, %c0_95], %119 {strides = array<i32>} : memref<8x128xf32, #tpu.memory_space<vmem>>, vector<8x128xf32>,
      %cst_96 = arith.constant dense<0.000000e+00> : vector<12x128xf32>
      %121 = tpu.matmul %10, %119, %cst_96 {dimension_numbers = #tpu.dot_dimension_numbers<[1], [0], [0], [1], [0, 0, 1, 1], [], []>} : vector<12x8xf32>, vector<8x128xf32>, vector<12x128xf32> -> vector<12x128xf32>
      %cst_97 = arith.constant dense<0.000000e+00> : vector<12x128xf32>
      %122 = tpu.matmul %16, %119, %cst_97 {dimension_numbers = #tpu.dot_dimension_numbers<[1], [0], [0], [1], [0, 0, 1, 1], [], []>} : vector<12x8xf32>, vector<8x128xf32>, vector<12x128xf32> -> vector<12x128xf32>
      %cst_98 = arith.constant dense<0.000000e+00> : vector<12x32xf32>
      %123 = tpu.matmul %10, %98, %cst_98 {dimension_numbers = #tpu.dot_dimension_numbers<[1], [0], [0], [1], [0, 0, 1, 1], [], []>} : vector<12x8xf32>, vector<8x32xf32>, vector<12x32xf32> -> vector<12x32xf32>
      %cst_99 = arith.constant dense<0.000000e+00> : vector<12x32xf32>
      %124 = tpu.matmul %16, %98, %cst_99 {dimension_numbers = #tpu.dot_dimension_numbers<[1], [0], [0], [1], [0, 0, 1, 1], [], []>} : vector<12x8xf32>, vector<8x32xf32>, vector<12x32xf32> -> vector<12x32xf32>
      %c0_100 = arith.constant 0 : index
      %c0_101 = arith.constant 0 : index
      %125 = vector.load %arg26[%c0_100, %c0_101] : memref<128x64xf32, #tpu.memory_space<vmem>>, vector<128x64xf32>
      %cst_102 = arith.constant dense<0.000000e+00> : vector<12x64xf32>
      %126 = tpu.matmul %121, %125, %cst_102 {dimension_numbers = #tpu.dot_dimension_numbers<[1], [0], [0], [1], [0, 0, 1, 1], [], []>} : vector<12x128xf32>, vector<128x64xf32>, vector<12x64xf32> -> vector<12x64xf32>
      %c0_103 = arith.constant 0 : index
      %c0_104 = arith.constant 0 : index
      %127 = vector.load %arg27[%c0_103, %c0_104] : memref<128x64xf32, #tpu.memory_space<vmem>>, vector<128x64xf32>
      %cst_105 = arith.constant dense<0.000000e+00> : vector<12x64xf32>
      %128 = tpu.matmul %122, %127, %cst_105 {dimension_numbers = #tpu.dot_dimension_numbers<[1], [0], [0], [1], [0, 0, 1, 1], [], []>} : vector<12x128xf32>, vector<128x64xf32>, vector<12x64xf32> -> vector<12x64xf32>
      %129 = arith.addf %126, %128 : vector<12x64xf32>
      %c0_106 = arith.constant 0 : index
      %c0_107 = arith.constant 0 : index
      %130 = vector.load %arg28[%c0_106, %c0_107] : memref<32x64xf32, #tpu.memory_space<vmem>>, vector<32x64xf32>
      %cst_108 = arith.constant dense<0.000000e+00> : vector<12x64xf32>
      %131 = tpu.matmul %123, %130, %cst_108 {dimension_numbers = #tpu.dot_dimension_numbers<[1], [0], [0], [1], [0, 0, 1, 1], [], []>} : vector<12x32xf32>, vector<32x64xf32>, vector<12x64xf32> -> vector<12x64xf32>
      %132 = arith.addf %129, %131 : vector<12x64xf32>
      %c0_109 = arith.constant 0 : index
      %c0_110 = arith.constant 0 : index
      %133 = vector.load %arg29[%c0_109, %c0_110] : memref<32x64xf32, #tpu.memory_space<vmem>>, vector<32x64xf32>
      %cst_111 = arith.constant dense<0.000000e+00> : vector<12x64xf32>
      %134 = tpu.matmul %124, %133, %cst_111 {dimension_numbers = #tpu.dot_dimension_numbers<[1], [0], [0], [1], [0, 0, 1, 1], [], []>} : vector<12x32xf32>, vector<32x64xf32>, vector<12x64xf32> -> vector<12x64xf32>
      %135 = arith.addf %132, %134 : vector<12x64xf32>
      %c0_112 = arith.constant 0 : index
      %c0_113 = arith.constant 0 : index
      %136 = vector.load %arg30[%c0_112, %c0_113] : memref<1x64xf32, #tpu.memory_space<vmem>>, vector<1x64xf32>
      %137 = vector.broadcast %136 : vector<1x64xf32> to vector<12x64xf32>
      %138 = arith.addf %135, %137 : vector<12x64xf32>
      %cst_114 = arith.constant 0.000000e+00 : f32
      %139 = vector.broadcast %cst_114 : f32 to vector<12x64xf32>
      %140 = arith.maximumf %138, %139 : vector<12x64xf32>
      %c0_115 = arith.constant 0 : index
      %c0_116 = arith.constant 0 : index
      %141 = vector.load %arg31[%c0_115, %c0_116] : memref<64x128xf32, #tpu.memory_space<vmem>>, vector<64x128xf32>
      %cst_117 = arith.constant dense<0.000000e+00> : vector<12x128xf32>
      %142 = tpu.matmul %140, %141, %cst_117 {dimension_numbers = #tpu.dot_dimension_numbers<[1], [0], [0], [1], [0, 0, 1, 1], [], []>} : vector<12x64xf32>, vector<64x128xf32>, vector<12x128xf32> -> vector<12x128xf32>
      %c0_118 = arith.constant 0 : index
      %c0_119 = arith.constant 0 : index
      %143 = vector.load %arg32[%c0_118, %c0_119] : memref<1x128xf32, #tpu.memory_space<vmem>>, vector<1x128xf32>
      %144 = vector.broadcast %143 : vector<1x128xf32> to vector<12x128xf32>
      %145 = arith.addf %142, %144 : vector<12x128xf32>
      %cst_120 = arith.constant 0.000000e+00 : f32
      %146 = vector.broadcast %cst_120 : f32 to vector<12x128xf32>
      %147 = arith.maximumf %145, %146 : vector<12x128xf32>
      %c0_121 = arith.constant 0 : index
      %c0_122 = arith.constant 0 : index
      %148 = vector.load %arg36[%c0_121, %c0_122] : memref<12x128xf32, #tpu.memory_space<vmem>>, vector<12x128xf32>
      tpu.vector_store %arg36[%c0_121, %c0_122], %147 {strides = array<i32>} : memref<12x128xf32, #tpu.memory_space<vmem>>, vector<12x128xf32>,
    } else {
    }
    return
  }
  func.func @transform_0(%arg0: i32) -> (i32, i32) {
    %c0_i32 = arith.constant 0 : i32
    %c0_i32_0 = arith.constant 0 : i32
    %c0_i32_1 = arith.constant 0 : i32
    return %c0_i32, %c0_i32_0 : i32, i32
  }
  func.func @transform_1(%arg0: i32) -> (i32, i32) {
    %c0_i32 = arith.constant 0 : i32
    %c0_i32_0 = arith.constant 0 : i32
    %c0_i32_1 = arith.constant 0 : i32
    return %c0_i32, %c0_i32_0 : i32, i32
  }
  func.func @transform_2(%arg0: i32) -> (i32, i32) {
    %c0_i32 = arith.constant 0 : i32
    %c0_i32_0 = arith.constant 0 : i32
    %c0_i32_1 = arith.constant 0 : i32
    return %c0_i32, %c0_i32_0 : i32, i32
  }
  func.func @transform_3(%arg0: i32) -> (i32, i32) {
    %c0_i32 = arith.constant 0 : i32
    %c0_i32_0 = arith.constant 0 : i32
    %c0_i32_1 = arith.constant 0 : i32
    return %c0_i32, %c0_i32_0 : i32, i32
  }
  func.func @transform_4(%arg0: i32) -> (i32, i32) {
    %c0_i32 = arith.constant 0 : i32
    %c0_i32_0 = arith.constant 0 : i32
    %c0_i32_1 = arith.constant 0 : i32
    return %c0_i32, %c0_i32_0 : i32, i32
  }
  func.func @transform_5(%arg0: i32) -> (i32, i32) {
    %c0_i32 = arith.constant 0 : i32
    %c0_i32_0 = arith.constant 0 : i32
    %c0_i32_1 = arith.constant 0 : i32
    return %c0_i32, %c0_i32_0 : i32, i32
  }
  func.func @transform_6(%arg0: i32) -> (i32, i32) {
    %c0_i32 = arith.constant 0 : i32
    %c0_i32_0 = arith.constant 0 : i32
    %c0_i32_1 = arith.constant 0 : i32
    return %c0_i32, %c0_i32_0 : i32, i32
  }
  func.func @transform_7(%arg0: i32) -> (i32, i32, i32) {
    %c0_i32 = arith.constant 0 : i32
    %c0_i32_0 = arith.constant 0 : i32
    %c0_i32_1 = arith.constant 0 : i32
    return %arg0, %c0_i32, %c0_i32_0 : i32, i32, i32
  }
  func.func @transform_8(%arg0: i32) -> (i32, i32, i32) {
    %c0_i32 = arith.constant 0 : i32
    %c0_i32_0 = arith.constant 0 : i32
    %c0_i32_1 = arith.constant 0 : i32
    return %arg0, %c0_i32, %c0_i32_0 : i32, i32, i32
  }
  func.func @transform_9(%arg0: i32) -> (i32, i32, i32) {
    %c0_i32 = arith.constant 0 : i32
    %c0_i32_0 = arith.constant 0 : i32
    %c0_i32_1 = arith.constant 0 : i32
    return %arg0, %c0_i32, %c0_i32_0 : i32, i32, i32
  }
  func.func @transform_10(%arg0: i32) -> (i32, i32, i32) {
    %c0_i32 = arith.constant 0 : i32
    %c0_i32_0 = arith.constant 0 : i32
    %c0_i32_1 = arith.constant 0 : i32
    return %arg0, %c0_i32, %c0_i32_0 : i32, i32, i32
  }
  func.func @transform_11(%arg0: i32) -> (i32, i32, i32) {
    %c0_i32 = arith.constant 0 : i32
    %c0_i32_0 = arith.constant 0 : i32
    %c0_i32_1 = arith.constant 0 : i32
    return %arg0, %c0_i32, %c0_i32_0 : i32, i32, i32
  }
  func.func @transform_12(%arg0: i32) -> (i32, i32, i32) {
    %c0_i32 = arith.constant 0 : i32
    %c0_i32_0 = arith.constant 0 : i32
    %c0_i32_1 = arith.constant 0 : i32
    return %arg0, %c0_i32, %c0_i32_0 : i32, i32, i32
  }
  func.func @transform_13(%arg0: i32) -> (i32, i32, i32) {
    %c0_i32 = arith.constant 0 : i32
    %c0_i32_0 = arith.constant 0 : i32
    %c0_i32_1 = arith.constant 0 : i32
    return %arg0, %c0_i32, %c0_i32_0 : i32, i32, i32
  }
  func.func @transform_14(%arg0: i32) -> (i32, i32, i32) {
    %c0_i32 = arith.constant 0 : i32
    %c0_i32_0 = arith.constant 0 : i32
    %c0_i32_1 = arith.constant 0 : i32
    return %arg0, %c0_i32, %c0_i32_0 : i32, i32, i32
  }
  func.func @transform_15(%arg0: i32) -> (i32, i32, i32) {
    %c0_i32 = arith.constant 0 : i32
    %c0_i32_0 = arith.constant 0 : i32
    %c0_i32_1 = arith.constant 0 : i32
    return %arg0, %c0_i32, %c0_i32_0 : i32, i32, i32
  }
  func.func @transform_16(%arg0: i32) -> (i32, i32, i32) {
    %c0_i32 = arith.constant 0 : i32
    %c0_i32_0 = arith.constant 0 : i32
    %c0_i32_1 = arith.constant 0 : i32
    return %arg0, %c0_i32, %c0_i32_0 : i32, i32, i32
  }
  func.func @transform_17(%arg0: i32) -> (i32, i32, i32) {
    %c0_i32 = arith.constant 0 : i32
    %c0_i32_0 = arith.constant 0 : i32
    %c0_i32_1 = arith.constant 0 : i32
    return %arg0, %c0_i32, %c0_i32_0 : i32, i32, i32
  }
  func.func @transform_18(%arg0: i32) -> (i32, i32, i32) {
    %c0_i32 = arith.constant 0 : i32
    %c0_i32_0 = arith.constant 0 : i32
    %c0_i32_1 = arith.constant 0 : i32
    return %arg0, %c0_i32, %c0_i32_0 : i32, i32, i32
  }
  func.func @transform_19(%arg0: i32) -> (i32, i32, i32) {
    %c0_i32 = arith.constant 0 : i32
    %c0_i32_0 = arith.constant 0 : i32
    %c0_i32_1 = arith.constant 0 : i32
    return %arg0, %c0_i32, %c0_i32_0 : i32, i32, i32
  }
  func.func @transform_20(%arg0: i32) -> (i32, i32, i32) {
    %c0_i32 = arith.constant 0 : i32
    %c0_i32_0 = arith.constant 0 : i32
    %c0_i32_1 = arith.constant 0 : i32
    return %arg0, %c0_i32, %c0_i32_0 : i32, i32, i32
  }
  func.func @transform_21(%arg0: i32) -> (i32, i32) {
    %c0_i32 = arith.constant 0 : i32
    %c0_i32_0 = arith.constant 0 : i32
    %c0_i32_1 = arith.constant 0 : i32
    return %c0_i32, %c0_i32_0 : i32, i32
  }
  func.func @transform_22(%arg0: i32) -> (i32, i32) {
    %c0_i32 = arith.constant 0 : i32
    %c0_i32_0 = arith.constant 0 : i32
    %c0_i32_1 = arith.constant 0 : i32
    return %c0_i32, %c0_i32_0 : i32, i32
  }
  func.func @transform_23(%arg0: i32) -> (i32, i32) {
    %c0_i32 = arith.constant 0 : i32
    %c0_i32_0 = arith.constant 0 : i32
    %c0_i32_1 = arith.constant 0 : i32
    return %c0_i32, %c0_i32_0 : i32, i32
  }
  func.func @transform_24(%arg0: i32) -> (i32, i32) {
    %c0_i32 = arith.constant 0 : i32
    %c0_i32_0 = arith.constant 0 : i32
    %c0_i32_1 = arith.constant 0 : i32
    return %c0_i32, %c0_i32_0 : i32, i32
  }
  func.func @transform_25(%arg0: i32) -> (i32, i32) {
    %c0_i32 = arith.constant 0 : i32
    %c0_i32_0 = arith.constant 0 : i32
    %c0_i32_1 = arith.constant 0 : i32
    return %c0_i32, %c0_i32_0 : i32, i32
  }
  func.func @transform_26(%arg0: i32) -> (i32, i32) {
    %c0_i32 = arith.constant 0 : i32
    %c0_i32_0 = arith.constant 0 : i32
    %c0_i32_1 = arith.constant 0 : i32
    return %c0_i32, %c0_i32_0 : i32, i32
  }
  func.func @transform_27(%arg0: i32) -> (i32, i32) {
    %c0_i32 = arith.constant 0 : i32
    %c0_i32_0 = arith.constant 0 : i32
    %c0_i32_1 = arith.constant 0 : i32
    return %c0_i32, %c0_i32_0 : i32, i32
  }
  func.func @transform_28(%arg0: i32) -> (i32, i32) {
    %c0_i32 = arith.constant 0 : i32
    %c0_i32_0 = arith.constant 0 : i32
    %c0_i32_1 = arith.constant 0 : i32
    return %c0_i32, %c0_i32_0 : i32, i32
  }
  func.func @transform_29(%arg0: i32) -> (i32, i32) {
    %c0_i32 = arith.constant 0 : i32
    %c0_i32_0 = arith.constant 0 : i32
    %c0_i32_1 = arith.constant 0 : i32
    return %c0_i32, %c0_i32_0 : i32, i32
  }
  func.func @transform_30(%arg0: i32) -> (i32, i32) {
    %c0_i32 = arith.constant 0 : i32
    %c0_i32_0 = arith.constant 0 : i32
    %c0_i32_1 = arith.constant 0 : i32
    return %c0_i32, %c0_i32_0 : i32, i32
  }
  func.func @transform_31(%arg0: i32) -> (i32, i32) {
    %c0_i32 = arith.constant 0 : i32
    %c0_i32_0 = arith.constant 0 : i32
    %c0_i32_1 = arith.constant 0 : i32
    return %c0_i32, %c0_i32_0 : i32, i32
  }
  func.func @transform_32(%arg0: i32) -> (i32, i32) {
    %c0_i32 = arith.constant 0 : i32
    %c0_i32_0 = arith.constant 0 : i32
    %c0_i32_1 = arith.constant 0 : i32
    return %c0_i32, %c0_i32_0 : i32, i32
  }
  func.func @transform_33(%arg0: i32) -> (i32, i32) {
    %c0_i32 = arith.constant 0 : i32
    %c0_i32_0 = arith.constant 0 : i32
    %c0_i32_1 = arith.constant 0 : i32
    return %c0_i32, %c0_i32_0 : i32, i32
  }
  func.func @transform_34(%arg0: i32) -> (i32, i32) {
    %c0_i32 = arith.constant 0 : i32
    %c0_i32_0 = arith.constant 0 : i32
    %c0_i32_1 = arith.constant 0 : i32
    return %c0_i32, %c0_i32_0 : i32, i32
  }
  func.func @transform_35(%arg0: i32) -> (i32, i32) {
    %c0_i32 = arith.constant 0 : i32
    %c0_i32_0 = arith.constant 0 : i32
    %c0_i32_1 = arith.constant 0 : i32
    return %c0_i32, %c0_i32_0 : i32, i32
  }
}

</mosaic_0001>

<bundles_post_ra>
// kernel: sg2im_forward.3
= control target key start
LH: loop header
LB: loop body
LE: loop exit
PB: predicated region body
PF: predicated region fallthrough
CT: control target
= control target key end

     0   :  { %s535_s12 = smov 0   ;;  %s610_s0 = inlined_call_operand.vmem [shape: s32[8,1], index: 0, kind: input, shape index: {}]   ;;  %s611_s1 = inlined_call_operand.vmem [shape: f32[8,4], index: 1, kind: input, shape index: {}]   ;;  %s612_s2 = inlined_call_operand.vmem [shape: f32[32,8], index: 2, kind: input, shape index: {}]   ;;  %s613_s3 = inlined_call_operand.vmem [shape: f32[2,32,256], index: 3, kind: output, shape index: {}]  }
   0x1 LB: > { %s541_s13 = sadd.s32 4294967295, %s505_s12   ;;  %p446_p0 = scmp.ge.s32.totalorder %s505_s12, 1  ;;  %s505_s12 = sphi %s535_s12, %s13_s12  }
   0x2   : > { %p127_p1 = scmp.lt.s32.totalorder %s505_s12, 3 }
   0x4   : > { %p128_p2 = pnand %p446_p0, %p127_p1 }
   0x5   : > { %s507_s16 = smov (!%p128_p2), 2   ;;  %s512_s17 = smov (!%p128_p2), 127  }
   0x6   : > { %131 = sbr.rel (%p128_p2) target bundleno = 629 (0x275), region = 32  ;;  %s514_s18 = smov (!%p128_p2), 126  }
   0x7   : > { %p146_p3 = scmp.lt.s32.totalorder (!%p128_p2), %s541_s13, 1 }
   0xb   : > { %v151_v0 = vld [vmem:[%s611_s1] sm:$0xff]  ;;  %v508_v1 = vmov 0   ;;  %v509_v2 = vmov 1   ;;  %v510_v3 = vmov 3   ;;  %v511_v4 = vmov 2  }
   0xc   : > { %153 = vrot.lane.b32.xlu0 %v151_v0, %s507_s16  ;;  %492 = vset.pattern.permute.xlu1 %v508_v1  ;;  %v513_v22 = vmov 0.0   ;;  %v300_v24 = vld [vmem:[%s610_s0] sm:$0xff]  ;;  %v301_v25 = vstv %s541_s13  ;;  %v182_v29 = vlaneseq  ;;  %v616_v8 = vmov 0  ;;  %s625_s13 = smov (!%p146_p3, %s541_s13), 1 }
   0xd   : > { %493 = vset.pattern.permute.xlu2 %v509_v2  ;;  %495 = vset.pattern.permute.xlu0 %v510_v3  ;;  %vm302_vm7 = vcmp.eq.s32.totalorder %v300_v24, %v301_v25  ;;  %s473_s29 = sshll.u32 %s625_s13, 6 }
   0xe   : > { %211 = vperm.xlu2 %493, %v151_v0   ;;  %v462_v26 = vsel %vm302_vm7, 1.0, %v513_v22  ;;  %v183_v30 = vand.u32 127, %v182_v29  ;;  %s150_s5 = scalar_lea.vmem %s613_s3, %s473_s29 }
  0x10   : > { %v185_v31 = vshra.s32 %v183_v30, 4  ;;  %v184_v32 = vadd.s32 128, %v183_v30  ;;  %v187_v33 = vand.u32 15, %v183_v30 }
  0x12   : > { %v193_v34 = vcvt.s32.f32 %v185_v31  ;;  %v188_v35 = vand.u32 15, %v184_v32  ;;  %v186_v36 = vshra.s32 %v184_v32, 4  ;;  %v189_v37 = vcvt.s32.f32 %v187_v33 }
  0x14   : > { %v195_v38 = vmul.f32 0.06666667, %v193_v34  ;;  %v190_v40 = vcvt.s32.f32 %v188_v35  ;;  %v194_v41 = vcvt.s32.f32 %v186_v36  ;;  %v191_v42 = vmul.f32 0.06666667, %v189_v37 }
  0x16   : > { %494 = vset.pattern.permute.xlu2 %v511_v4  ;;  %v192_v44 = vmul.f32 0.06666667, %v190_v40  ;;  %v196_v46 = vmul.f32 0.06666667, %v194_v41 }
  0x68   : > { %v212_v39 = vpop.permute.xlu2 %211 }
  0x69   : > { %v214_v43 = vsub.f32 %v195_v38, %v212_v39  ;;  %v215_v51 = vsub.f32 %v196_v46, %v212_v39  ;;  %v320_v46 = vld [vmem:[%s612_s2 + $0x18] sm:$0xff] }
  0x7e   : > { %v154_v5 = vpop.permute.xlu0 %153 }
  0x7f   : > { %v156_v6 = vsub.f32 %v151_v0, %v154_v5 }
  0x81   : > { %v157_v7 = vand.u32 2147483647, %v156_v6 }
  0x83   : > { %vm548_vm0 = vcmp.gt.f32.partialorder %v157_v7, 1e-08 }
  0x84   : > { %v166_v9 = vsel %vm548_vm0, %v156_v6, 1.0  ;;  %v159_v10 = vsel %vm548_vm0, 1, %v508_v1 }
  0x85   : > { %497 = vrcp.f32 %v166_v9  ;;  %160 = vrot.lane.b32.xlu0 %v159_v10, %s512_s17  ;;  %v178_v14 = vand.u32 2147483648, %v166_v9  ;;  %v176_v16 = vand.u32 2147483647, %v166_v9  ;;  %vm172_vm2 = vweird.f32 %v166_v9 }
  0x87   : > { %v179_v18 = vor.u32 1.1754944e-38, %v178_v14  ;;  %vm177_vm4 = vcmp.eq.f32.partialorder %v176_v16, 8.507059e+37 }
  0x8b   : > { %v498_v11 = vpop.eup %497 }
  0x8c   : > { %v168_v12 = vmul.f32 %v498_v11, %v166_v9  ;;  %vm173_vm1 = vweird.f32 %v498_v11  ;;  %v618_v9 = vmov 0 }
  0x8d   : > { %vm174_vm3 = vmor %vm172_vm2, %vm173_vm1 }
  0x8e   : > { %v169_v13 = vsub.f32 1.0, %v168_v12 }
  0x90   : > { %v170_v15 = vmul.f32 %v498_v11, %v169_v13 }
  0x92   : > { %v171_v17 = vadd.f32 %v498_v11, %v170_v15 }
  0x94   : > { %v175_v19 = vsel %vm174_vm3, %v498_v11, %v171_v17 }
  0x95   : > { %v180_v20 = vsel %vm177_vm4, %v179_v18, %v175_v19 }
  0x96   : > { %205 = vperm.xlu2 %494, %v180_v20   ;;  %217 = vperm.xlu0 %495, %v180_v20  }
  0x9e   : > { %496 = vset.pattern.permute.xlu0 %v508_v1 }
  0xf0   : > { %v206_v52 = vpop.permute.xlu2 %205 }
  0xf7   : > { %v161_v21 = vpop.permute.xlu0 %160 }
  0xf8   : > { %vm162_vm5 = vcmp.ne.s32.totalorder %v161_v21, 0 }
  0xf9   : > { %vm163_vm6 = vmand %vm548_vm0, %vm162_vm5 }
  0xfa   : > { %v449_v23 = vsel %vm163_vm6, 1.0, %v513_v22 }
  0xfb   : > { %306 = vrot.lane.b32.xlu1 %v449_v23, %s514_s18 }
 0x103   : > { %198 = vperm.xlu1 %492, %v151_v0  }
 0x108   : > { %v218_v47 = vpop.permute.xlu0 %217 }
 0x109   : > { %v220_v49 = vmul.f32 %v218_v47, %v214_v43  ;;  %v221_v56 = vmul.f32 %v218_v47, %v215_v51  ;;  %v318_v47 = vld [vmem:[%s612_s2 + $0x8] sm:$0xff] }
 0x10b   : > { %v260_v54 = vmul.f32 8.0, %v220_v49  ;;  %v261_v60 = vmul.f32 8.0, %v221_v56 }
 0x10d   : > { %v456_v58 = vadd.f32 -0.5, %v260_v54  ;;  %v457_v0 = vadd.f32 -0.5, %v261_v60 }
 0x10f   : > { %v264_v62 = vfloor.f32 %v456_v58  ;;  %v265_v4 = vfloor.f32 %v457_v0 }
 0x111   : > { %v278_v2 = vadd.f32 1.0, %v264_v62  ;;  %vm268_vm8 = vcmp.ge.f32.partialorder %v264_v62, 0.0  ;;  %vm270_vm9 = vcmp.le.f32.partialorder %v264_v62, 7.0  ;;  %v279_v7 = vadd.f32 1.0, %v265_v4 }
 0x112   : > { %vm564_vm0 = vmand %vm268_vm8, %vm270_vm9  ;;  %v266_v13 = vsub.f32 %v456_v58, %v264_v62  ;;  %v267_v14 = vsub.f32 %v457_v0, %v265_v4 }
 0x113   : > { %vm280_vm10 = vcmp.ge.f32.partialorder %v278_v2, 0.0  ;;  %vm282_vm11 = vcmp.le.f32.partialorder %v278_v2, 7.0  ;;  %v617_v8 = vsel %vm564_vm0, 4294967295, %v616_v8  ;;  %vm281_vm7 = vcmp.ge.f32.partialorder %v279_v7, 0.0 }
 0x114   : > { %vm568_vm1 = vmand %vm280_vm10, %vm282_vm11  ;;  %vm283_vm8 = vcmp.le.f32.partialorder %v279_v7, 7.0  ;;  %vm269_vm10 = vcmp.ge.f32.partialorder %v265_v4, 0.0  ;;  %vm271_vm11 = vcmp.le.f32.partialorder %v265_v4, 7.0  ;;  %v290_v21 = vsub.f32 1.0, %v266_v13 }
 0x115   : > { %v619_v9 = vsel %vm568_vm1, 4294967295, %v618_v9  ;;  %v291_v23 = vsub.f32 1.0, %v267_v14 }
 0x16d   : > { %v307_v27 = vpop.permute.xlu1 %306 }
 0x16e   : > { %v309_v28 = vmul.f32 %v462_v26, %v307_v27 }
 0x170   : > { %312 = vperm.xlu1 %492, %v309_v28  }
 0x175   : > { %v199_v45 = vpop.permute.xlu1 %198 }
 0x176   : > { %v201_v48 = vsub.f32 %v191_v42, %v199_v45  ;;  %v202_v50 = vsub.f32 %v192_v44, %v199_v45  ;;  %v317_v45 = vld [vmem:[%s612_s2] sm:$0xff] }
 0x178   : > { %v208_v53 = vmul.f32 %v206_v52, %v201_v48  ;;  %v209_v55 = vmul.f32 %v206_v52, %v202_v50 }
 0x17a   : > { %v222_v57 = vmul.f32 8.0, %v208_v53  ;;  %v223_v59 = vmul.f32 8.0, %v209_v55 }
 0x17c   : > { %v450_v61 = vadd.f32 -0.5, %v222_v57  ;;  %v451_v63 = vadd.f32 -0.5, %v223_v59 }
 0x17e   : > { %v226_v1 = vfloor.f32 %v450_v61  ;;  %v227_v3 = vfloor.f32 %v451_v63 }
 0x180   : > { %v240_v5 = vadd.f32 1.0, %v226_v1  ;;  %v241_v6 = vadd.f32 1.0, %v227_v3  ;;  %vm230_vm12 = vcmp.ge.f32.partialorder %v226_v1, 0.0  ;;  %vm232_vm13 = vcmp.le.f32.partialorder %v226_v1, 7.0 }
 0x181   : > { %vm231_vm14 = vcmp.ge.f32.partialorder %v227_v3, 0.0  ;;  %vm233_vm15 = vcmp.le.f32.partialorder %v227_v3, 7.0  ;;  %vm572_vm4 = vmand %vm230_vm12, %vm232_vm13  ;;  %v228_v11 = vsub.f32 %v450_v61, %v226_v1  ;;  %v229_v12 = vsub.f32 %v451_v63, %v227_v3 }
 0x182   : > { %vm242_vm2 = vcmp.ge.f32.partialorder %v240_v5, 0.0  ;;  %vm244_vm3 = vcmp.le.f32.partialorder %v240_v5, 7.0  ;;  %vm243_vm5 = vcmp.ge.f32.partialorder %v241_v6, 0.0  ;;  %vm245_vm6 = vcmp.le.f32.partialorder %v241_v6, 7.0  ;;  %vm235_vm9 = vmand %vm231_vm14, %vm233_vm15 }
 0x183   : > { %vm246_vm0 = vmand %vm242_vm2, %vm244_vm3  ;;  %v252_v15 = vsub.f32 1.0, %v228_v11  ;;  %v253_v16 = vsub.f32 1.0, %v229_v12  ;;  %v452_v17 = vsel %vm572_vm4, 1.0, %v513_v22  ;;  %v453_v18 = vsel %vm235_vm9, 1.0, %v513_v22 }
 0x184   : > { %vm247_vm1 = vmand %vm243_vm5, %vm245_vm6  ;;  %v454_v19 = vsel %vm246_vm0, 1.0, %v513_v22  ;;  %vm622_vm14 = vnez %v619_v9  ;;  %vm623_vm15 = vnez %v617_v8  ;;  %vm321_vm0 = vcmask 64512  }
 0x185   : > { %vm285_vm12 = vmand %vm281_vm7, %vm283_vm8  ;;  %v455_v20 = vsel %vm247_vm1, 1.0, %v513_v22  ;;  %v460_v24 = vsel %vm622_vm14, 1.0, %v513_v22  ;;  %v458_v26 = vsel %vm623_vm15, 1.0, %v513_v22  ;;  %v254_v28 = vmul.f32 %v452_v17, %v252_v15 }
 0x186   : > { %vm273_vm13 = vmand %vm269_vm10, %vm271_vm11  ;;  %v461_v25 = vsel %vm285_vm12, 1.0, %v513_v22  ;;  %v255_v29 = vmul.f32 %v453_v18, %v253_v16  ;;  %v256_v30 = vmul.f32 %v454_v19, %v228_v11  ;;  %v257_v31 = vmul.f32 %v455_v20, %v229_v12 }
 0x187   : > { %v459_v27 = vsel %vm273_vm13, 1.0, %v513_v22  ;;  %v294_v32 = vmul.f32 %v460_v24, %v266_v13  ;;  %v295_v33 = vmul.f32 %v461_v25, %v267_v14  ;;  %v292_v34 = vmul.f32 %v458_v26, %v290_v21  ;;  %v319_v22 = vld [vmem:[%s612_s2 + $0x10] sm:$0xff] }
 0x188   : > { %v293_v35 = vmul.f32 %v459_v27, %v291_v23  ;;  %v258_v36 = vadd.f32 %v256_v30, %v254_v28  ;;  %v259_v37 = vadd.f32 %v257_v31, %v255_v29 }
 0x189   : > { %v296_v38 = vadd.f32 %v294_v32, %v292_v34 }
 0x18a   : > { %v297_v39 = vadd.f32 %v295_v33, %v293_v35 }
 0x18b   : > { %v298_v40 = vmul.f32 %v296_v38, %v258_v36 }
 0x18c   : > { %v299_v41 = vmul.f32 %v297_v39, %v259_v37 }
 0x1e2   : > { %v313_v42 = vpop.permute.xlu1 %312 }
 0x1e3   : > { %v315_v43 = vmul.f32 %v313_v42, %v298_v40  ;;  %v316_v44 = vmul.f32 %v313_v42, %v299_v41 }
 0x1e5   : > { %349 = vmatpush.msra.mxu0 %v315_v43  ;;  %474 = vmatpush.msra.mxu2 %v315_v43 }
 0x1e6   : > { %378 = vmatpush.msra.mxu1 %v316_v44  ;;  %475 = vmatpush.msra.mxu3 %v316_v44 }
 0x1e7   : > { %465 = vmatmul.msk.f32.vlgmr.msra.gmra.mxu2 %vm321_vm0, %v319_v22  ;;  %469 = vmatmul.msk.f32.vlgmr.msra.gmra.mxu3 %vm321_vm0, %v319_v22 }
 0x1e8   : > { %463 = vmatmul.msk.f32.vlgmr.msra.gmra.mxu0 %vm321_vm0, %v317_v45  ;;  %467 = vmatmul.msk.f32.vlgmr.msra.gmra.mxu1 %vm321_vm0, %v317_v45 }
 0x1ef   : > { %466 = vmatmul.msk.f32.gmra.mxu2 %vm321_vm0, %v320_v46  ;;  %470 = vmatmul.msk.f32.gmra.mxu3 %vm321_vm0, %v320_v46 }
 0x1f0   : > { %464 = vmatmul.msk.f32.gmra.mxu0 %vm321_vm0, %v318_v47  ;;  %468 = vmatmul.msk.f32.gmra.mxu1 %vm321_vm0, %v318_v47 }
 0x265   : > { %v351_v48 = vpop.f32.mrf.mxu0  ;;  %v380_v49 = vpop.f32.mrf.mxu1 }
 0x266   : > { %392 = vst [vmem:[%s150_s5] sm:$0xff] %v351_v48 }
 0x267   : > { %393 = vst [vmem:[%s150_s5 + $0x8] sm:$0xff] %v380_v49 }
 0x26a   : > { %v357_v50 = vpop.f32.mrf.mxu2  ;;  %v386_v51 = vpop.f32.mrf.mxu3 }
 0x26b   : > { %396 = vst [vmem:[%s150_s5 + $0x20] sm:$0xff] %v357_v50 }
 0x26c   : > { %397 = vst [vmem:[%s150_s5 + $0x28] sm:$0xff] %v386_v51 }
 0x26d   : > { %v354_v52 = vpop.f32.mrf.mxu0  ;;  %v383_v53 = vpop.f32.mrf.mxu1 }
 0x26e   : > { %394 = vst [vmem:[%s150_s5 + $0x10] sm:$0xff] %v354_v52 }
 0x26f   : > { %395 = vst [vmem:[%s150_s5 + $0x18] sm:$0xff] %v383_v53 }
 0x272   : > { %v360_v54 = vpop.f32.mrf.mxu2  ;;  %v389_v55 = vpop.f32.mrf.mxu3 }
 0x273   : > { %398 = vst [vmem:[%s150_s5 + $0x30] sm:$0xff] %v360_v54 }
 0x274   : > { %399 = vst [vmem:[%s150_s5 + $0x38] sm:$0xff] %v389_v55 }
 0x275 PF: > { %s13_s12 = sadd.s32 1, %s505_s12  }
 0x276   : > { %p10_p4 = scmp.ge.s32.totalorder %s13_s12, 4  }
 0x278   :  { %12 = sbr.rel (!%p10_p4) target bundleno = 1 (0x1), region = 59 }

// kernel: sg2im_forward.2
= control target key start
LH: loop header
LB: loop body
LE: loop exit
PB: predicated region body
PF: predicated region fallthrough
CT: control target
= control target key end

     0   :  { %s2551_s6 = smov 1   ;;  %s2552_s10 = smov 2   ;;  %s3063_s0 = inlined_call_operand.smem [shape: u32[36], index: -1, kind: input, shape index: {}] }
   0x1   :  { %s2599_s5 = sld [smem:[%s3063_s0]]   ;;  %s2553_s14 = smov 3  }
   0x2   :  { %s2604_s9 = sld [smem:[%s3063_s0 + %s2551_s6]]   ;;  %s2554_s18 = smov 4  }
   0x3   :  { %s2609_s13 = sld [smem:[%s3063_s0 + %s2552_s10]]   ;;  %s2555_s22 = smov 5  }
   0x4   :  { %s2614_s17 = sld [smem:[%s3063_s0 + %s2553_s14]]   ;;  %s2556_s26 = smov 6  }
   0x5   :  { %s2619_s21 = sld [smem:[%s3063_s0 + %s2554_s18]]   ;;  %s2557_s30 = smov 7  }
   0x6   :  { %s2624_s25 = sld [smem:[%s3063_s0 + %s2555_s22]]   ;;  %s2558_s4 = smov 8  }
   0x7   :  { %3079 = sst [smem:[#allocation7_spill]] %s2599_s5  ;;  %s2559_s10 = smov 9  }
   0x8   :  { %3080 = sst [smem:[#allocation8_spill]] %s2604_s9  ;;  %s2560_s15 = smov 10  }
   0x9   :  { %3081 = sst [smem:[#allocation9_spill]] %s2609_s13  ;;  %s2561_s20 = smov 11  }
   0xa   :  { %3082 = sst [smem:[#allocation10_spill]] %s2614_s17  ;;  %s2563_s1 = smov 13  }
   0xb   :  { %3083 = sst [smem:[#allocation11_spill]] %s2619_s21  ;;  %s2564_s7 = smov 14  }
   0xc   :  { %3084 = sst [smem:[#allocation12_spill]] %s2624_s25  ;;  %s2566_s22 = smov 16  }
   0xd   :  { %s2629_s29 = sld [smem:[%s3063_s0 + %s2556_s26]]   ;;  %s2562_s26 = smov 12  }
   0xe   :  { %s2634_s3 = sld [smem:[%s3063_s0 + %s2557_s30]]   ;;  %s2567_s28 = smov 17  }
   0xf   :  { %s2639_s8 = sld [smem:[%s3063_s0 + %s2558_s4]]  }
  0x10   :  { %s2644_s14 = sld [smem:[%s3063_s0 + %s2559_s10]]  }
  0x11   :  { %s2649_s19 = sld [smem:[%s3063_s0 + %s2560_s15]]   ;;  %s2565_s15 = smov 15  }
  0x12   :  { %s2654_s24 = sld [smem:[%s3063_s0 + %s2561_s20]]  }
  0x13   :  { %3085 = sst [smem:[#allocation13_spill]] %s2629_s29 }
  0x14   :  { %3086 = sst [smem:[#allocation14_spill]] %s2634_s3 }
  0x15   :  { %3087 = sst [smem:[#allocation15_spill]] %s2639_s8 }
  0x16   :  { %s2659_s30 = sld [smem:[%s3063_s0 + %s2562_s26]]  }
  0x17   :  { %s2664_s6 = sld [smem:[%s3063_s0 + %s2563_s1]]  }
  0x18   :  { %s2669_s12 = sld [smem:[%s3063_s0 + %s2564_s7]]   ;;  %s2568_s7 = smov 18  }
  0x19   :  { %s2674_s20 = sld [smem:[%s3063_s0 + %s2565_s15]]   ;;  %s2569_s15 = smov 19  }
  0x1a   :  { %s2679_s27 = sld [smem:[%s3063_s0 + %s2566_s22]]   ;;  %s2570_s22 = smov 20  }
  0x1b   :  { %s2684_s4 = sld [smem:[%s3063_s0 + %s2567_s28]]   ;;  %s2571_s28 = smov 21  }
  0x1c   :  { %s2689_s25 = sld [smem:[%s3063_s0 + %s2568_s7]]   ;;  %s2572_s7 = smov 22  }
  0x1d   :  { %s2694_s21 = sld [smem:[%s3063_s0 + %s2569_s15]]   ;;  %s2573_s15 = smov 23  }
  0x1e   :  { %s2699_s29 = sld [smem:[%s3063_s0 + %s2570_s22]]   ;;  %s2574_s22 = smov 24  }
  0x1f   :  { %s2704_s13 = sld [smem:[%s3063_s0 + %s2571_s28]]   ;;  %s2575_s28 = smov 25  }
  0x20   :  { %s2709_s17 = sld [smem:[%s3063_s0 + %s2572_s7]]   ;;  %s2576_s7 = smov 26  }
  0x21   :  { %3088 = sst [smem:[#allocation16_spill]] %s2684_s4 }
  0x22   :  { %s2714_s9 = sld [smem:[%s3063_s0 + %s2573_s15]]   ;;  %s2577_s15 = smov 27  }
  0x23   :  { %s2719_s5 = sld [smem:[%s3063_s0 + %s2574_s22]]   ;;  %s2578_s22 = smov 28  }
  0x25   :  { %3089 = sst [smem:[#allocation17_spill]] %s2704_s13 }
  0x26   :  { %3090 = sst [smem:[#allocation18_spill]] %s2709_s17 }
  0x27   :  { %s2724_s13 = sld [smem:[%s3063_s0 + %s2575_s28]]   ;;  %s2579_s28 = smov 29  }
  0x28   :  { %3091 = sst [smem:[#allocation19_spill]] %s2714_s9 }
  0x29   :  { %3092 = sst [smem:[#allocation20_spill]] %s2719_s5 }
  0x2a   :  { %s2729_s17 = sld [smem:[%s3063_s0 + %s2576_s7]]   ;;  %s2580_s7 = smov 30  }
  0x2b   :  { %s2734_s9 = sld [smem:[%s3063_s0 + %s2577_s15]]   ;;  %s2581_s15 = smov 31  }
  0x2c   :  { %s2739_s5 = sld [smem:[%s3063_s0 + %s2578_s22]]   ;;  %s2582_s22 = smov 32  }
  0x2d   :  { %3093 = sst [smem:[#allocation21_spill]] %s2724_s13 }
  0x2e   :  { %s2744_s13 = sld [smem:[%s3063_s0 + %s2579_s28]]   ;;  %s2583_s28 = smov 33  }
  0x30   :  { %3094 = sst [smem:[#allocation22_spill]] %s2729_s17 }
  0x31   :  { %3095 = sst [smem:[#allocation23_spill]] %s2734_s9 }
  0x32   :  { %3096 = sst [smem:[#allocation24_spill]] %s2739_s5 }
  0x33   :  { %s2749_s17 = sld [smem:[%s3063_s0 + %s2580_s7]]   ;;  %s2584_s7 = smov 34  }
  0x34   :  { %3097 = sst [smem:[#allocation25_spill]] %s2744_s13 }
  0x35   :  { %s2754_s9 = sld [smem:[%s3063_s0 + %s2581_s15]]   ;;  %s2585_s15 = smov 35  }
  0x36   :  { %s2759_s5 = sld [smem:[%s3063_s0 + %s2582_s22]]  }
  0x37   :  { %s2764_s13 = sld [smem:[%s3063_s0 + %s2583_s28]]  }
  0x39   :  { %3098 = sst [smem:[#allocation26_spill]] %s2749_s17 }
  0x3a   :  { %s2769_s17 = sld [smem:[%s3063_s0 + %s2584_s7]]  }
  0x3b   :  { %3099 = sst [smem:[#allocation27_spill]] %s2754_s9 }
  0x3c   :  { %s2774_s9 = sld [smem:[%s3063_s0 + %s2585_s15]]  }
  0x3d   :  { %3100 = sst [smem:[#allocation28_spill]] %s2764_s13 }
  0x40   :  { %3101 = sst [smem:[#allocation29_spill]] %s2769_s17 }
  0x42   :  { %3102 = sst [smem:[#allocation30_spill]] %s2774_s9 }
  0x43   :  { %77 = vsyncpa [#allocation5], 0  ;;  %s2776_s22 = smov 0  }
  0x44 LB: > { %3103 = sst [smem:[#allocation31_spill]] %s2549_s22  ;;  %s2782_s23 = sadd.s32 4294967295, %s2549_s22   ;;  %s2549_s22 = sphi %s2776_s22, %s83_s22  }
  0x45   : > { %p2367_p0 = scmp.ge.s32.totalorder %s2549_s22, 1  ;;  %p1079_p1 = scmp.lt.s32.totalorder %s2549_s22, 4 }
  0x47   : > { %p1080_p2 = pnand %p2367_p0, %p1079_p1 }
  0x48   : > { %s3104_s3 = sld [smem:[#allocation14_spill]] (!%p1080_p2)  ;;  %p1215_p3 = scmp.lt.s32.totalorder (!%p1080_p2), %s2782_s23, 2 }
  0x49   : > { %1083 = sbr.rel (%p1080_p2) target bundleno = 1756 (0x6dc), region = 148  ;;  %s3105_s8 = sld [smem:[#allocation15_spill]] (!%p1080_p2) }
  0x4a   : > { %s3106_s4 = sld [smem:[#allocation16_spill]] (!%p1080_p2)  ;;  %p2384_p4 = scmp.ne.s32.totalorder (!%p1080_p2), %s2782_s23, 0 }
  0x4e   : > { %s2788_s0 = scalar_select %p1215_p3, %s2782_s23, 2 }
  0x50   : > { %s2434_s26 = sshll.u32 %s2788_s0, 5  ;;  %s2437_s10 = sshll.u32 %s2788_s0, 6 }
  0x51   : > { %s2794_s1 = scalar_lea.vmem %s3104_s3, %s2434_s26  ;;  %s2797_s2 = scalar_lea.vmem %s3105_s8, %s2434_s26 }
  0x52   : > { %s2800_s7 = scalar_lea.vmem %s2644_s14, %s2434_s26  ;;  %s2804_s11 = scalar_lea.vmem %s2654_s24, %s2437_s10 }
  0x53   : > { %s1240_s15 = scalar_lea.vmem %s2659_s30, %s2788_s0  ;;  %s2809_s16 = scalar_lea.vmem %s2664_s6, %s2437_s10 }
  0x54   : > { %s1248_s18 = scalar_lea.vmem %s2669_s12, %s2788_s0  ;;  %s2814_s22 = scalar_lea.vmem %s2674_s20, %s2437_s10 }
  0x55   : > { %s2819_s9 = scalar_lea.vmem %s3106_s4, %s2437_s10  ;;  %s2824_s28 = scalar_lea.vmem %s2694_s21, %s2437_s10 }
  0x56   : > { %s1272_s3 = scalar_lea.vmem %s2699_s29, %s2788_s0  ;;  %1276 = sbr.rel (%p2384_p4) target bundleno = 97 (0x61), region = 152 }
  0x57   : > { %s3107_s26 = sld [smem:[#allocation7_spill]] (!%p2384_p4) }
  0x58   : > { %s3108_s8 = sld [smem:[#allocation8_spill]] (!%p2384_p4) }
  0x5b   : > { %vm1278_vm0 = vcmask 261120   ;;  %vm1283_vm1 = vcmask 257024  }
  0x5d   : > { %v1277_v0 = vld [vmem:[%s3107_s26] sm:$0xff] }
  0x5e   : > { %v1280_v1 = vld [vmem:[%s3108_s8] sm:$0xff]  ;;  %v1281_v2 = vld [vmem:[%s3108_s8 + $0x8] sm:$0xf]  ;;  %1279 = vst.msk [vmem:[#allocation2] sm:$0xff] %vm1278_vm0, %v1277_v0 }
  0x5f   : > { %1282 = vst.msk [vmem:[#allocation3] sm:$0xff] %vm1278_vm0, %v1280_v1 }
  0x60   : > { %1284 = vst.msk [vmem:[#allocation3 + $0x8] sm:$0xf] %vm1283_vm1, %v1281_v2 }
  0x61 PF: > { %s3109_s13 = sld [smem:[#allocation10_spill]]  ;;  %v2586_v5 = vmov 0   ;;  %v1396_v9 = vld [vmem:[%s2797_s2 + $0x18] sm:$0xff]  ;;  %v1395_v12 = vld [vmem:[%s2797_s2 + $0x10] sm:$0xff]  ;;  %v1394_v15 = vld [vmem:[%s2797_s2 + $0x8] sm:$0xff]  ;;  %v1290_v18 = vlaneseq  ;;  %vm1330_vm2 = vcmask 64512   ;;  %s3115_s10 = scalar_lea.vmem %s2679_s27, %s2788_s0 }
  0x62   : > { %s3110_s17 = sld [smem:[#allocation9_spill]]  ;;  %2497 = vset.pattern.permute.xlu1 %v2586_v5  ;;  %2496 = vset.pattern.permute.xlu0 %v2586_v5  ;;  %v1392_v10 = vld [vmem:[%s2794_s1 + $0x18] sm:$0xff]  ;;  %v1391_v13 = vld [vmem:[%s2794_s1 + $0x10] sm:$0xff]  ;;  %v1390_v16 = vld [vmem:[%s2794_s1 + $0x8] sm:$0xff]  ;;  %v2587_v22 = vmov 0.0   ;;  %vm1397_vm7 = vcmask 261120  }
  0x63   : > { %2498 = vset.pattern.permute.xlu2 %v2586_v5  ;;  %v1459_v11 = vld [vmem:[%s2800_s7 + $0x18] sm:$0xff]  ;;  %1416 = vmatpush.msra.mxu2 %v1396_v9  ;;  %v1458_v14 = vld [vmem:[%s2800_s7 + $0x10] sm:$0xff]  ;;  %v1457_v17 = vld [vmem:[%s2800_s7 + $0x8] sm:$0xff]  ;;  %v1291_v19 = vand.u32 127, %v1290_v18  ;;  %vm1511_vm8 = vcmask 523264   ;;  %vm1621_vm9 = vcmask 1043456  }
  0x64   : > { %1445 = vmatpush.msra.mxu3 %v1392_v10  ;;  %v1393_v29 = vld [vmem:[%s2797_s2] sm:$0xff]  ;;  %v1506_v38 = vld [vmem:[%s2804_s11 + $0x38] sm:$0xff]  ;;  %v1505_v41 = vld [vmem:[%s2804_s11 + $0x30] sm:$0xff]  ;;  %s3112_s2 = sld [smem:[#allocation13_spill]]  ;;  %vm1617_vm11 = vcmask 97280   ;;  %vm1752_vm12 = vcmask 257024  }
  0x65   : > { %v1285_v8 = vld [vmem:[#allocation2] sm:$0xff]  ;;  %1417 = vmatpush.msra.mxu2 %v1395_v12  ;;  %v1550_v39 = vld [vmem:[%s2809_s16 + $0x38] sm:$0xff]  ;;  %v1549_v42 = vld [vmem:[%s2809_s16 + $0x30] sm:$0xff]  ;;  %p2413_p5 = scmp.ne.s32.totalorder %s2782_s23, 2 }
  0x66   : > { %1352 = vmatpush.msra.mxu0 %v1285_v8  ;;  %1381 = vmatpush.msra.mxu1 %v1285_v8  ;;  %v1389_v30 = vld [vmem:[%s2794_s1] sm:$0xff]  ;;  %v1286_v32 = vld [vmem:[#allocation3] sm:$0xff]  ;;  %v1587_v40 = vld [vmem:[%s2814_s22 + $0x38] sm:$0xff]  ;;  %s3111_s1 = scalar_lea.vmem %s2649_s19, %s2788_s0  ;;  %s3124_s26 = sld [smem:[#allocation24_spill]] (!%p2413_p5) }
  0x67   : > { %v1304_v3 = vld [vmem:[%s3109_s13] sm:$0xff]  ;;  %v1305_v6 = vld [vmem:[%s3109_s13 + $0x8] sm:$0xf]  ;;  %1446 = vmatpush.msra.mxu3 %v1391_v13  ;;  %1418 = vmatpush.msra.mxu2 %v1394_v15  ;;  %v1287_v33 = vld [vmem:[#allocation3 + $0x8] sm:$0xf] }
  0x68   : > { %v1288_v4 = vld [vmem:[%s3110_s17] sm:$0xff]  ;;  %1307 = vperm.xlu1 %2497, %v1304_v3   ;;  %v1289_v7 = vld [vmem:[%s3110_s17 + $0x8] sm:$0xf]  ;;  %1478 = vmatpush.msrb.mxu0 %v1459_v11  ;;  %v1586_v43 = vld [vmem:[%s2814_s22 + $0x30] sm:$0xff] }
  0x69   : > { %1293 = vperm.xlu0 %2496, %v1288_v4   ;;  %1447 = vmatpush.msra.mxu3 %v1390_v16  ;;  %v1456_v31 = vld [vmem:[%s2800_s7] sm:$0xff]  ;;  %v1504_v44 = vld [vmem:[%s2804_s11 + $0x28] sm:$0xff]  ;;  %v1502_v50 = vld [vmem:[%s2804_s11 + $0x18] sm:$0xff]  ;;  %s3114_s7 = sld [smem:[#allocation12_spill]] }
  0x6a   : > { %1479 = vmatpush.msrb.mxu0 %v1458_v14  ;;  %1419 = vmatpush.msra.mxu2 %v1393_v29  ;;  %v1548_v45 = vld [vmem:[%s2809_s16 + $0x28] sm:$0xff]  ;;  %v1503_v47 = vld [vmem:[%s2804_s11 + $0x20] sm:$0xff]  ;;  %v1546_v51 = vld [vmem:[%s2809_s16 + $0x18] sm:$0xff] }
  0x6b   : > { %1448 = vmatpush.msra.mxu3 %v1389_v30  ;;  %2395 = vmatmul.msk.f32.vlgmr.msra.gmra.mxu2 %vm1397_vm7, %v1286_v32  ;;  %v1585_v46 = vld [vmem:[%s2814_s22 + $0x28] sm:$0xff]  ;;  %v1547_v48 = vld [vmem:[%s2809_s16 + $0x20] sm:$0xff]  ;;  %v1583_v52 = vld [vmem:[%s2814_s22 + $0x18] sm:$0xff]  ;;  %v1320_v30 = vshrl.u32 %v1290_v18, 7 }
  0x6c   : > { %1480 = vmatpush.msrb.mxu0 %v1457_v17  ;;  %1526 = vmatpush.msrb.mxu1 %v1506_v38  ;;  %v1584_v49 = vld [vmem:[%s2814_s22 + $0x20] sm:$0xff]  ;;  %v1501_v53 = vld [vmem:[%s2804_s11 + $0x10] sm:$0xff]  ;;  %v1500_v56 = vld [vmem:[%s2804_s11 + $0x8] sm:$0xff] }
  0x6d   : > { %1563 = vmatpush.msrb.mxu2 %v1550_v39  ;;  %1600 = vmatpush.msrb.mxu3 %v1587_v40  ;;  %v1545_v54 = vld [vmem:[%s2809_s16 + $0x10] sm:$0xff]  ;;  %v1544_v57 = vld [vmem:[%s2809_s16 + $0x8] sm:$0xff]  ;;  %v1499_v59 = vld [vmem:[%s2804_s11] sm:$0xff]  ;;  %s3118_s11 = sld [smem:[#allocation19_spill]] (!%p2413_p5) }
  0x6e   : > { %1481 = vmatpush.msrb.mxu0 %v1456_v31  ;;  %1527 = vmatpush.msrb.mxu1 %v1505_v41  ;;  %v1582_v55 = vld [vmem:[%s2814_s22 + $0x10] sm:$0xff]  ;;  %v1581_v58 = vld [vmem:[%s2814_s22 + $0x8] sm:$0xff]  ;;  %v1543_v60 = vld [vmem:[%s2809_s16] sm:$0xff]  ;;  %s3122_s16 = sld [smem:[#allocation22_spill]] (!%p2413_p5) }
  0x6f   : > { %1564 = vmatpush.msrb.mxu2 %v1549_v42  ;;  %1601 = vmatpush.msrb.mxu3 %v1586_v43  ;;  %v1580_v61 = vld [vmem:[%s2814_s22] sm:$0xff]  ;;  %v1685_v14 = vld [vmem:[%s2819_s9 + $0x38] sm:$0xff]  ;;  %v1684_v15 = vld [vmem:[%s2819_s9 + $0x30] sm:$0xff]  ;;  %s3113_s22 = sld [smem:[#allocation11_spill]] }
  0x70   : > { %1310 = vperm.xlu1 %2497, %v1305_v6   ;;  %1528 = vmatpush.msrb.mxu1 %v1504_v44  ;;  %v2499_v2 = vld [vmem:[%s3111_s1] ss:$0 sm:$0xff]  ;;  %v1683_v16 = vld [vmem:[%s2819_s9 + $0x28] sm:$0xff]  ;;  %s3125_s1 = sld [smem:[#allocation23_spill]] (!%p2413_p5) }
  0x71   : > { %1296 = vperm.xlu0 %2496, %v1289_v7   ;;  %1565 = vmatpush.msrb.mxu2 %v1548_v45  ;;  %v1671_v13 = vld [vmem:[%s3112_s2] sm:$0xff]  ;;  %s3126_s2 = sld [smem:[#allocation26_spill]] (!%p2413_p5) }
  0x72   : > { %1602 = vmatpush.msrb.mxu3 %v1585_v46  ;;  %1529 = vmatpush.msrb.mxu1 %v1503_v47  ;;  %v1682_v17 = vld [vmem:[%s2819_s9 + $0x20] sm:$0xff] }
  0x73   : > { %2396 = vmatmul.msk.f32.gmra.mxu2 %vm1397_vm7, %v1287_v33  ;;  %1674 = vperm.xlu2 %2498, %v1671_v13   ;;  %v2502_v39 = vld [vmem:[%s3115_s10] ss:$0 sm:$0xff]  ;;  %s3129_s10 = sld [smem:[#allocation30_spill]] (!%p2413_p5) }
  0x74   : > { %1566 = vmatpush.msrb.mxu2 %v1547_v48  ;;  %1603 = vmatpush.msrb.mxu3 %v1584_v49  ;;  %v2503_v18 = vld [vmem:[%s3114_s7] ss:$0 sm:$0xff]  ;;  %s3128_s7 = sld [smem:[#allocation27_spill]] (!%p2413_p5) }
  0x75   : > { %1530 = vmatpush.msrb.mxu1 %v1502_v50  ;;  %v2504_v31 = vld [vmem:[%s3113_s22] ss:$0 sm:$0xff]  ;;  %vm1327_vm13 = vcmp.eq.s32.totalorder %v2503_v18, %v1320_v30  ;;  %s3127_s22 = sld [smem:[#allocation25_spill]] (!%p2413_p5) }
  0x76   : > { %1567 = vmatpush.msrb.mxu2 %v1546_v51  ;;  %1604 = vmatpush.msrb.mxu3 %v1583_v52  ;;  %vm1322_vm10 = vcmp.eq.s32.totalorder %v2504_v31, %v1320_v30  ;;  %v2390_v50 = vsel %vm1327_vm13, 1.0, %v2587_v22  ;;  %v1679_v51 = vld [vmem:[%s2819_s9 + $0x8] sm:$0xff]  ;;  %v1678_v52 = vld [vmem:[%s2819_s9] sm:$0xff] }
  0x77   : > { %1531 = vmatpush.msrb.mxu1 %v1501_v53  ;;  %v2389_v41 = vsel %vm1322_vm10, 1.0, %v2587_v22  ;;  %v1721_v53 = vld [vmem:[%s2824_s28 + $0x38] sm:$0xff] }
  0x78   : > { %1568 = vmatpush.msrb.mxu2 %v1545_v54  ;;  %1605 = vmatpush.msrb.mxu3 %v1582_v55  ;;  %v1720_v54 = vld [vmem:[%s2824_s28 + $0x30] sm:$0xff]  ;;  %v1719_v55 = vld [vmem:[%s2824_s28 + $0x28] sm:$0xff] }
  0x79   : > { %1532 = vmatpush.msrb.mxu1 %v1500_v56  ;;  %v1718_v56 = vld [vmem:[%s2824_s28 + $0x20] sm:$0xff] }
  0x7a   : > { %1569 = vmatpush.msrb.mxu2 %v1544_v57  ;;  %1606 = vmatpush.msrb.mxu3 %v1581_v58  ;;  %v1716_v57 = vld [vmem:[%s2824_s28 + $0x10] sm:$0xff] }
  0x7b   : > { %1533 = vmatpush.msrb.mxu1 %v1499_v59 }
  0x7c   : > { %1570 = vmatpush.msrb.mxu2 %v1543_v60  ;;  %1607 = vmatpush.msrb.mxu3 %v1580_v61 }
  0x7e   : > { %1701 = vmatpush.msra.mxu2 %v1685_v14 }
  0x80   : > { %1702 = vmatpush.msra.mxu2 %v1684_v15 }
  0x82   : > { %1703 = vmatpush.msra.mxu2 %v1683_v16 }
  0x84   : > { %1704 = vmatpush.msra.mxu2 %v1682_v17 }
  0xcd   : > { %v1675_v60 = vpop.permute.xlu2 %1674 }
  0xda   : > { %v1308_v20 = vpop.permute.xlu1 %1307 }
  0xdb   : > { %v1294_v21 = vpop.permute.xlu0 %1293  ;;  %vm1312_vm3 = vcmp.eq.s32.totalorder %v1308_v20, %v1291_v19  ;;  %v1680_v20 = vld [vmem:[%s2819_s9 + $0x10] sm:$0xff] }
  0xdc   : > { %vm1298_vm4 = vcmp.eq.s32.totalorder %v1294_v21, %v1291_v19  ;;  %v2847_v23 = vsel %vm1312_vm3, 1.0, %v2587_v22 }
  0xdd   : > { %v2850_v24 = vsel %vm1298_vm4, 1.0, %v2587_v22  ;;  %2393 = vmatmul.msk.f32.vlgmr.msra.gmra.mxu1 %vm1330_vm2, %v2847_v23 }
  0xde   : > { %2391 = vmatmul.msk.f32.vlgmr.msra.gmra.mxu0 %vm1330_vm2, %v2850_v24 }
  0xe2   : > { %v1311_v25 = vpop.permute.xlu1 %1310 }
  0xe3   : > { %v1297_v26 = vpop.permute.xlu0 %1296  ;;  %vm1313_vm5 = vcmp.eq.s32.totalorder %v1311_v25, %v1291_v19  ;;  %v2501_v25 = vld [vmem:[%s1248_s18] ss:$0 sm:$0xff]  ;;  %s3123_s18 = sld [smem:[#allocation29_spill]] (!%p2413_p5) }
  0xe4   : > { %vm1299_vm6 = vcmp.eq.s32.totalorder %v1297_v26, %v1291_v19  ;;  %v2857_v27 = vsel %vm1313_vm5, 1.0, %v2587_v22  ;;  %v1681_v19 = vld [vmem:[%s2819_s9 + $0x18] sm:$0xff]  ;;  %v2500_v26 = vld [vmem:[%s1240_s15] ss:$0 sm:$0xff]  ;;  %s3116_s9 = scalar_lea.vmem %s2689_s25, %s2788_s0  ;;  %s3120_s0 = sld [smem:[#allocation20_spill]] (!%p2413_p5) }
  0xe5   : > { %v2860_v28 = vsel %vm1299_vm6, 1.0, %v2587_v22  ;;  %2394 = vmatmul.msk.f32.gmra.mxu1 %vm1330_vm2, %v2857_v27  ;;  %1705 = vmatpush.msra.mxu2 %v1681_v19  ;;  %v1717_v22 = vld [vmem:[%s2824_s28 + $0x18] sm:$0xff]  ;;  %s3121_s15 = sld [smem:[#allocation21_spill]] (!%p2413_p5) }
  0xe6   : > { %2392 = vmatmul.msk.f32.gmra.mxu0 %vm1330_vm2, %v2860_v28 }
  0xe7   : > { %1706 = vmatpush.msra.mxu2 %v1680_v20 }
  0xe9   : > { %1707 = vmatpush.msra.mxu2 %v1679_v51 }
  0xeb   : > { %1708 = vmatpush.msra.mxu2 %v1678_v52 }
  0xee   : > { %v1421_v62 = vpop.f32.mrf.mxu2 }
  0xf6   : > { %v1424_v5 = vpop.f32.mrf.mxu2 }
 0x15a   : > { %v1383_v35 = vpop.f32.mrf.mxu1 }
 0x15b   : > { %v1354_v34 = vpop.f32.mrf.mxu0  ;;  %2399 = vmatmul.msk.f32.vlgmr.msrb.gmra.mxu0 %vm1397_vm7, %v1383_v35 }
 0x15c   : > { %2397 = vmatmul.msk.f32.vlgmr.msra.gmra.mxu3 %vm1397_vm7, %v1354_v34 }
 0x15d   : > { %1737 = vmatpush.msra.mxu3 %v1721_v53 }
 0x15f   : > { %1738 = vmatpush.msra.mxu3 %v1720_v54 }
 0x161   : > { %1739 = vmatpush.msra.mxu3 %v1719_v55 }
 0x162   : > { %v1386_v37 = vpop.f32.mrf.mxu1 }
 0x163   : > { %v1357_v36 = vpop.f32.mrf.mxu0  ;;  %2400 = vmatmul.msk.f32.gmra.mxu0 %vm1397_vm7, %v1386_v37  ;;  %1740 = vmatpush.msra.mxu3 %v1718_v56 }
 0x164   : > { %2398 = vmatmul.msk.f32.gmra.mxu3 %vm1397_vm7, %v1357_v36 }
 0x165   : > { %1741 = vmatpush.msra.mxu3 %v1717_v22 }
 0x167   : > { %1742 = vmatpush.msra.mxu3 %v1716_v57 }
 0x1d8   : > { %v1483_v63 = vpop.f32.mrf.mxu0 }
 0x1df   : > { %v1450_v0 = vpop.f32.mrf.mxu3 }
 0x1e0   : > { %v1451_v1 = vadd.f32 %v1450_v0, %v1421_v62  ;;  %v1486_v9 = vpop.f32.mrf.mxu0  ;;  %v1714_v0 = vld [vmem:[%s2824_s28] sm:$0xff] }
 0x1e2   : > { %v1489_v3 = vadd.f32 %v1483_v63, %v1451_v1  ;;  %v1715_v63 = vld [vmem:[%s2824_s28 + $0x8] sm:$0xff]  ;;  %v2505_v1 = vld [vmem:[%s3116_s9] ss:$0 sm:$0xff]  ;;  %s3117_s28 = sld [smem:[#allocation17_spill]] (!%p2413_p5) }
 0x1e3   : > { %1743 = vmatpush.msra.mxu3 %v1715_v63 }
 0x1e4   : > { %v1495_v4 = vadd.f32 %v2499_v2, %v1489_v3 }
 0x1e5   : > { %1744 = vmatpush.msra.mxu3 %v1714_v0 }
 0x1e6   : > { %v1497_v6 = vmax.f32 %v1495_v4, 0.0 }
 0x1e7   : > { %v1453_v7 = vpop.f32.mrf.mxu3 }
 0x1e8   : > { %v1454_v8 = vadd.f32 %v1453_v7, %v1424_v5  ;;  %2401 = vmatmul.msk.f32.vlgmr.msrb.gmra.mxu1 %vm1511_vm8, %v1497_v6  ;;  %2403 = vmatmul.msk.f32.vlgmr.msrb.gmra.mxu2 %vm1511_vm8, %v1497_v6  ;;  %v2506_v5 = vld [vmem:[%s1272_s3] ss:$0 sm:$0xff]  ;;  %s3119_s3 = sld [smem:[#allocation18_spill]] (!%p2413_p5) }
 0x1e9   : > { %2405 = vmatmul.msk.f32.vlgmr.msrb.gmra.mxu3 %vm1511_vm8, %v1497_v6 }
 0x1ea   : > { %v1490_v10 = vadd.f32 %v1486_v9, %v1454_v8 }
 0x1ec   : > { %v1496_v11 = vadd.f32 %v2499_v2, %v1490_v10 }
 0x1ee   : > { %v1498_v12 = vmax.f32 %v1496_v11, 0.0 }
 0x1f0   : > { %2402 = vmatmul.msk.f32.gmra.mxu1 %vm1511_vm8, %v1498_v12  ;;  %2404 = vmatmul.msk.f32.gmra.mxu2 %vm1511_vm8, %v1498_v12 }
 0x1f1   : > { %2406 = vmatmul.msk.f32.gmra.mxu3 %vm1511_vm8, %v1498_v12 }
 0x265   : > { %v1535_v21 = vpop.f32.mrf.mxu1 }
 0x266   : > { %v1536_v35 = vadd.f32 %v2500_v26, %v1535_v21 }
 0x268   : > { %v1541_v40 = vmax.f32 %v1536_v35, 0.0 }
 0x26b   : > { %v1572_v29 = vpop.f32.mrf.mxu2 }
 0x26c   : > { %v1573_v32 = vadd.f32 %v2501_v25, %v1572_v29  ;;  %v1609_v33 = vpop.f32.mrf.mxu3 }
 0x26d   : > { %v1538_v34 = vpop.f32.mrf.mxu1  ;;  %v1610_v45 = vadd.f32 %v2502_v39, %v1609_v33 }
 0x26e   : > { %v1578_v36 = vmax.f32 %v1573_v32, 0.0  ;;  %v1539_v37 = vadd.f32 %v2500_v26, %v1538_v34 }
 0x26f   : > { %v1615_v49 = vmax.f32 %v1610_v45, 0.0 }
 0x270   : > { %1751 = vst.msk [vmem:[#allocation3] sm:$0xff] %vm1397_vm7, %v1578_v36  ;;  %v1542_v38 = vmax.f32 %v1539_v37, 0.0 }
 0x271   : > { %1755 = vst.msk [vmem:[#allocation4] sm:$0xff] %vm1397_vm7, %v1578_v36 }
 0x272   : > { %2409 = vmatpush.msk.msra.mxu1 %vm1621_vm9, %v1542_v38 }
 0x273   : > { %v1575_v42 = vpop.f32.mrf.mxu2 }
 0x274   : > { %v1576_v43 = vadd.f32 %v2501_v25, %v1575_v42  ;;  %v1612_v44 = vpop.f32.mrf.mxu3  ;;  %1666 = vmatpush.msra.mxu1 %v1541_v40 }
 0x275   : > { %v1613_v46 = vadd.f32 %v2502_v39, %v1612_v44  ;;  %2410 = vmatmul.msk.f32.vlgmr.msra.gmra.mxu1 %vm1617_vm11, %v2389_v41 }
 0x276   : > { %v1579_v47 = vmax.f32 %v1576_v43, 0.0 }
 0x277   : > { %v1616_v48 = vmax.f32 %v1613_v46, 0.0 }
 0x278   : > { %1753 = vst.msk [vmem:[#allocation3 + $0x8] sm:$0xf] %vm1752_vm12, %v1579_v47 }
 0x279   : > { %1756 = vst.msk [vmem:[#allocation4 + $0x8] sm:$0xf] %vm1752_vm12, %v1579_v47  ;;  %2407 = vmatpush.msk.msra.mxu0 %vm1621_vm9, %v1616_v48 }
 0x27b   : > { %1640 = vmatpush.msra.mxu0 %v1615_v49 }
 0x27c   : > { %2408 = vmatmul.msk.f32.vlgmr.msra.gmra.mxu0 %vm1617_vm11, %v2390_v50 }
 0x2f2   : > { %v1668_v58 = vpop.f32.mrf.mxu1 }
 0x2f9   : > { %v1642_v59 = vpop.f32.mrf.mxu0 }
 0x2fa   : > { %v1669_v61 = vadd.f32 %v1668_v58, %v1642_v59 }
 0x2fc   : > { %v1677_v62 = vmul.f32 %v1675_v60, %v1669_v61 }
 0x2fe   : > { %2411 = vmatmul.msk.f32.vlgmr.msra.gmra.mxu2 %vm1511_vm8, %v1677_v62 }
 0x381   : > { %v1710_v2 = vpop.f32.mrf.mxu2 }
 0x382   : > { %v1711_v3 = vadd.f32 %v2505_v1, %v1710_v2 }
 0x384   : > { %v1713_v4 = vmax.f32 %v1711_v3, 0.0 }
 0x386   : > { %2412 = vmatmul.msk.f32.vlgmr.msra.gmra.mxu3 %vm1511_vm8, %v1713_v4 }
 0x409   : > { %v1746_v6 = vpop.f32.mrf.mxu3 }
 0x40a   : > { %v1747_v7 = vadd.f32 %v2506_v5, %v1746_v6 }
 0x40b   : > { %1760 = sbr.rel (%p2413_p5) target bundleno = 1734 (0x6c6), region = 156 }
 0x40c   : > { %v1749_v8 = vmax.f32 %v1747_v7, 0.0 }
 0x40e   : > { %1750 = vst.msk [vmem:[#allocation2] sm:$0xff] %vm1397_vm7, %v1749_v8 }
 0x40f   : > { %1754 = vst.msk [vmem:[%s2759_s5] sm:$0xff] %vm1397_vm7, %v1749_v8 }
 0x410   : > { %v1764_v9 = vld [vmem:[%s3117_s28 + $0x18] sm:$0xff]  ;;  %v1763_v10 = vld [vmem:[%s3117_s28 + $0x10] sm:$0xff]  ;;  %v1762_v13 = vld [vmem:[%s3117_s28 + $0x8] sm:$0xff] }
 0x411   : > { %1784 = vmatpush.msra.mxu0 %v1764_v9  ;;  %v1800_v11 = vld [vmem:[%s3118_s11 + $0x38] sm:$0xff]  ;;  %v1799_v12 = vld [vmem:[%s3118_s11 + $0x30] sm:$0xff]  ;;  %v1798_v14 = vld [vmem:[%s3118_s11 + $0x28] sm:$0xff] }
 0x412   : > { %1816 = vmatpush.msra.mxu1 %v1800_v11  ;;  %v1761_v15 = vld [vmem:[%s3117_s28] sm:$0xff]  ;;  %v1796_v17 = vld [vmem:[%s3118_s11 + $0x18] sm:$0xff]  ;;  %v1795_v19 = vld [vmem:[%s3118_s11 + $0x10] sm:$0xff] }
 0x413   : > { %1785 = vmatpush.msra.mxu0 %v1763_v10  ;;  %v1797_v16 = vld [vmem:[%s3118_s11 + $0x20] sm:$0xff]  ;;  %v1794_v20 = vld [vmem:[%s3118_s11 + $0x8] sm:$0xff]  ;;  %v1937_v32 = vld [vmem:[%s3121_s15 + $0x78] sm:$0xff] }
 0x414   : > { %1817 = vmatpush.msra.mxu1 %v1799_v12  ;;  %v1793_v21 = vld [vmem:[%s3118_s11] sm:$0xff]  ;;  %v1936_v33 = vld [vmem:[%s3121_s15 + $0x70] sm:$0xff]  ;;  %v1935_v35 = vld [vmem:[%s3121_s15 + $0x68] sm:$0xff] }
 0x415   : > { %1786 = vmatpush.msra.mxu0 %v1762_v13  ;;  %v2507_v25 = vld [vmem:[%s3119_s3] ss:$0 sm:$0xff]  ;;  %v1953_v38 = vld [vmem:[%s3122_s16 + $0x78] sm:$0xff]  ;;  %v1952_v40 = vld [vmem:[%s3122_s16 + $0x70] sm:$0xff] }
 0x416   : > { %1818 = vmatpush.msra.mxu1 %v1798_v14  ;;  %v2508_v31 = vld [vmem:[%s3120_s0] ss:$0 sm:$0xff]  ;;  %v1933_v18 = vld [vmem:[%s3121_s15 + $0x58] sm:$0xff]  ;;  %v1951_v41 = vld [vmem:[%s3122_s16 + $0x68] sm:$0xff] }
 0x417   : > { %1787 = vmatpush.msra.mxu0 %v1761_v15  ;;  %v1934_v39 = vld [vmem:[%s3121_s15 + $0x60] sm:$0xff]  ;;  %v1932_v42 = vld [vmem:[%s3121_s15 + $0x50] sm:$0xff]  ;;  %v1931_v44 = vld [vmem:[%s3121_s15 + $0x48] sm:$0xff] }
 0x418   : > { %2414 = vmatmul.msk.f32.vlgmr.msra.gmra.mxu0 %vm1397_vm7, %v1749_v8  ;;  %1819 = vmatpush.msra.mxu1 %v1797_v16  ;;  %v1950_v43 = vld [vmem:[%s3122_s16 + $0x60] sm:$0xff]  ;;  %v1948_v45 = vld [vmem:[%s3122_s16 + $0x50] sm:$0xff]  ;;  %v1947_v47 = vld [vmem:[%s3122_s16 + $0x48] sm:$0xff] }
 0x419   : > { %1891 = vmatpush.msrb.mxu0 %v1749_v8  ;;  %v1930_v46 = vld [vmem:[%s3121_s15 + $0x40] sm:$0xff]  ;;  %v1929_v48 = vld [vmem:[%s3121_s15 + $0x38] sm:$0xff]  ;;  %v1928_v50 = vld [vmem:[%s3121_s15 + $0x30] sm:$0xff] }
 0x41a   : > { %1820 = vmatpush.msra.mxu1 %v1796_v17  ;;  %v1946_v49 = vld [vmem:[%s3122_s16 + $0x40] sm:$0xff]  ;;  %v1927_v51 = vld [vmem:[%s3121_s15 + $0x28] sm:$0xff]  ;;  %v1944_v52 = vld [vmem:[%s3122_s16 + $0x30] sm:$0xff] }
 0x41b   : > { %1977 = vmatpush.msra.mxu0 %v1937_v32  ;;  %v1926_v53 = vld [vmem:[%s3121_s15 + $0x20] sm:$0xff]  ;;  %v1943_v54 = vld [vmem:[%s3122_s16 + $0x28] sm:$0xff]  ;;  %v1925_v55 = vld [vmem:[%s3121_s15 + $0x18] sm:$0xff] }
 0x41c   : > { %1821 = vmatpush.msra.mxu1 %v1795_v19  ;;  %v1942_v56 = vld [vmem:[%s3122_s16 + $0x20] sm:$0xff]  ;;  %v1924_v22 = vld [vmem:[%s3121_s15 + $0x10] sm:$0xff]  ;;  %v1941_v57 = vld [vmem:[%s3122_s16 + $0x18] sm:$0xff] }
 0x41d   : > { %1978 = vmatpush.msra.mxu0 %v1936_v33  ;;  %v1940_v58 = vld [vmem:[%s3122_s16 + $0x10] sm:$0xff]  ;;  %v1939_v59 = vld [vmem:[%s3122_s16 + $0x8] sm:$0xff]  ;;  %v1938_v60 = vld [vmem:[%s3122_s16] sm:$0xff] }
 0x41e   : > { %1822 = vmatpush.msra.mxu1 %v1794_v20  ;;  %v1922_v61 = vld [vmem:[%s3121_s15] sm:$0xff]  ;;  %v2038_v62 = vld [vmem:[%s3124_s26 + $0x18] sm:$0xff]  ;;  %v2002_v0 = vld [vmem:[%s3125_s1 + $0x10] sm:$0xff] }
 0x41f   : > { %1979 = vmatpush.msra.mxu0 %v1935_v35  ;;  %v2003_v63 = vld [vmem:[%s3125_s1 + $0x18] sm:$0xff]  ;;  %v2001_v1 = vld [vmem:[%s3125_s1 + $0x8] sm:$0xff]  ;;  %v2000_v2 = vld [vmem:[%s3125_s1] sm:$0xff] }
 0x420   : > { %2420 = vmatmul.msk.f32.vlgmr.msrb.gmra.mxu0 %vm1330_vm2, %v2850_v24  ;;  %1823 = vmatpush.msra.mxu1 %v1793_v21  ;;  %v2036_v4 = vld [vmem:[%s3124_s26 + $0x8] sm:$0xff]  ;;  %v2035_v5 = vld [vmem:[%s3124_s26] sm:$0xff]  ;;  %v2085_v13 = vld [vmem:[%s3126_s2 + $0x38] sm:$0xff] }
 0x421   : > { %1980 = vmatpush.msra.mxu0 %v1934_v39  ;;  %v2084_v14 = vld [vmem:[%s3126_s2 + $0x30] sm:$0xff]  ;;  %v2083_v15 = vld [vmem:[%s3126_s2 + $0x28] sm:$0xff]  ;;  %v2082_v16 = vld [vmem:[%s3126_s2 + $0x20] sm:$0xff] }
 0x422   : > { %2022 = vmatpush.msrb.mxu1 %v2003_v63  ;;  %v2081_v17 = vld [vmem:[%s3126_s2 + $0x18] sm:$0xff]  ;;  %v2080_v19 = vld [vmem:[%s3126_s2 + $0x10] sm:$0xff]  ;;  %v2079_v20 = vld [vmem:[%s3126_s2 + $0x8] sm:$0xff] }
 0x423   : > { %1981 = vmatpush.msra.mxu0 %v1933_v18  ;;  %v2078_v21 = vld [vmem:[%s3126_s2] sm:$0xff] }
 0x424   : > { %2023 = vmatpush.msrb.mxu1 %v2002_v0  ;;  %v2509_v32 = vld [vmem:[%s3127_s22] ss:$0 sm:$0xff] }
 0x425   : > { %1982 = vmatpush.msra.mxu0 %v1932_v42 }
 0x426   : > { %2024 = vmatpush.msrb.mxu1 %v2001_v1 }
 0x427   : > { %1983 = vmatpush.msra.mxu0 %v1931_v44  ;;  %v2510_v44 = vld [vmem:[%s3128_s7] ss:$0 sm:$0xff] }
 0x428   : > { %2421 = vmatmul.msk.f32.gmra.mxu0 %vm1330_vm2, %v2860_v28  ;;  %2025 = vmatpush.msrb.mxu1 %v2000_v2 }
 0x429   : > { %1984 = vmatpush.msra.mxu0 %v1930_v46 }
 0x42b   : > { %1985 = vmatpush.msra.mxu0 %v1929_v48 }
 0x42d   : > { %1986 = vmatpush.msra.mxu0 %v1928_v50 }
 0x42f   : > { %1987 = vmatpush.msra.mxu0 %v1927_v51 }
 0x431   : > { %1988 = vmatpush.msra.mxu0 %v1926_v53 }
 0x433   : > { %1989 = vmatpush.msra.mxu0 %v1925_v55 }
 0x435   : > { %1990 = vmatpush.msra.mxu0 %v1924_v22 }
 0x495   : > { %v1789_v26 = vpop.f32.mrf.mxu0 }
 0x496   : > { %v1790_v29 = vadd.f32 %v2507_v25, %v1789_v26 }
 0x498   : > { %v1792_v30 = vmax.f32 %v1790_v29, 0.0 }
 0x49a   : > { %2415 = vmatmul.msk.f32.vlgmr.msra.gmra.mxu1 %vm1511_vm8, %v1792_v30 }
 0x49b   : > { %2104 = vmatpush.msra.mxu1 %v2085_v13 }
 0x49d   : > { %v1893_v3 = vpop.f32.mrf.mxu0  ;;  %2105 = vmatpush.msra.mxu1 %v2084_v14 }
 0x49f   : > { %2106 = vmatpush.msra.mxu1 %v2083_v15 }
 0x4a1   : > { %2107 = vmatpush.msra.mxu1 %v2082_v16 }
 0x4a2   : > { %2424 = vmatmul.msk.f32.vlgmr.msrb.gmra.mxu1 %vm1397_vm7, %v1893_v3 }
 0x4a3   : > { %2108 = vmatpush.msra.mxu1 %v2081_v17 }
 0x4a5   : > { %v1896_v6 = vpop.f32.mrf.mxu0  ;;  %2109 = vmatpush.msra.mxu1 %v2080_v19 }
 0x4a7   : > { %2110 = vmatpush.msra.mxu1 %v2079_v20 }
 0x4a9   : > { %2111 = vmatpush.msra.mxu1 %v2078_v21 }
 0x4aa   : > { %2425 = vmatmul.msk.f32.gmra.mxu1 %vm1397_vm7, %v1896_v6 }
 0x517   : > { %v1825_v34 = vpop.f32.mrf.mxu1 }
 0x518   : > { %v1826_v36 = vadd.f32 %v2508_v31, %v1825_v34 }
 0x51a   : > { %v1828_v37 = vmax.f32 %v1826_v36, 0.0 }
 0x51c   : > { %1829 = vst [vmem:[%s3123_s18] sm:$0xff] %v1828_v37  ;;  %1845 = vmatpush.msra.mxu2 %v1828_v37  ;;  %1868 = vmatpush.msra.mxu3 %v1828_v37 }
 0x51d   : > { %2416 = vmatmul.msk.f32.vlgmr.msra.gmra.mxu2 %vm1330_vm2, %v2850_v24  ;;  %2418 = vmatmul.msk.f32.vlgmr.msra.gmra.mxu3 %vm1330_vm2, %v2847_v23  ;;  %v1949_v24 = vld [vmem:[%s3122_s16 + $0x58] sm:$0xff] }
 0x51e   : > { %1914 = vmatpush.msrb.mxu2 %v1749_v8  ;;  %1954 = vmatpush.msrb.mxu3 %v1953_v38 }
 0x51f   : > { %v2027_v29 = vpop.f32.mrf.mxu1 }
 0x520   : > { %1955 = vmatpush.msrb.mxu3 %v1952_v40  ;;  %2057 = vmatpush.msra.mxu2 %v2038_v62 }
 0x522   : > { %1956 = vmatpush.msrb.mxu3 %v1951_v41 }
 0x524   : > { %1957 = vmatpush.msrb.mxu3 %v1950_v43 }
 0x525   : > { %2417 = vmatmul.msk.f32.gmra.mxu2 %vm1330_vm2, %v2860_v28  ;;  %2419 = vmatmul.msk.f32.gmra.mxu3 %vm1330_vm2, %v2857_v27  ;;  %v1945_v28 = vld [vmem:[%s3122_s16 + $0x38] sm:$0xff] }
 0x526   : > { %1958 = vmatpush.msrb.mxu3 %v1949_v24 }
 0x527   : > { %v2030_v39 = vpop.f32.mrf.mxu1 }
 0x528   : > { %1959 = vmatpush.msrb.mxu3 %v1948_v45 }
 0x52a   : > { %1960 = vmatpush.msrb.mxu3 %v1947_v47 }
 0x52c   : > { %1961 = vmatpush.msrb.mxu3 %v1946_v49 }
 0x52d   : > { %2422 = vmatmul.msk.f32.vlgmr.msrb.gmra.mxu2 %vm1330_vm2, %v2847_v23  ;;  %v1923_v23 = vld [vmem:[%s3121_s15 + $0x8] sm:$0xff] }
 0x52e   : > { %1962 = vmatpush.msrb.mxu3 %v1945_v28  ;;  %1991 = vmatpush.msra.mxu0 %v1923_v23 }
 0x530   : > { %1963 = vmatpush.msrb.mxu3 %v1944_v52  ;;  %1992 = vmatpush.msra.mxu0 %v1922_v61 }
 0x532   : > { %1964 = vmatpush.msrb.mxu3 %v1943_v54 }
 0x534   : > { %1965 = vmatpush.msrb.mxu3 %v1942_v56 }
 0x535   : > { %2423 = vmatmul.msk.f32.gmra.mxu2 %vm1330_vm2, %v2857_v27  ;;  %v2037_v27 = vld [vmem:[%s3124_s26 + $0x10] sm:$0xff] }
 0x536   : > { %1966 = vmatpush.msrb.mxu3 %v1941_v57  ;;  %2058 = vmatpush.msra.mxu2 %v2037_v27 }
 0x538   : > { %1967 = vmatpush.msrb.mxu3 %v1940_v58  ;;  %2059 = vmatpush.msra.mxu2 %v2036_v4 }
 0x53a   : > { %1968 = vmatpush.msrb.mxu3 %v1939_v59  ;;  %2060 = vmatpush.msra.mxu2 %v2035_v5 }
 0x53c   : > { %1969 = vmatpush.msrb.mxu3 %v1938_v60 }
 0x5a0   : > { %v1847_v7 = vpop.f32.mrf.mxu2  ;;  %v1870_v8 = vpop.f32.mrf.mxu3 }
 0x5a1   : > { %1970 = vmatmul.f32.vlgmr.msrb.gmra.mxu3 %v1870_v8  ;;  %1993 = vmatmul.f32.vlgmr.msra.gmra.mxu0 %v1847_v7 }
 0x5a8   : > { %v1850_v9 = vpop.f32.mrf.mxu2  ;;  %v1873_v10 = vpop.f32.mrf.mxu3 }
 0x5a9   : > { %1973 = vmatmul.f32.gmra.mxu3 %v1873_v10  ;;  %1996 = vmatmul.f32.gmra.mxu0 %v1850_v9 }
 0x5b0   : > { %v1916_v11 = vpop.f32.mrf.mxu2 }
 0x5b1   : > { %2426 = vmatmul.msk.f32.vlgmr.msra.gmra.mxu2 %vm1397_vm7, %v1916_v11 }
 0x5b8   : > { %v1919_v12 = vpop.f32.mrf.mxu2 }
 0x5b9   : > { %2427 = vmatmul.msk.f32.gmra.mxu2 %vm1397_vm7, %v1919_v12 }
 0x61e   : > { %v1994_v26 = vpop.f32.mrf.mxu0 }
 0x624   : > { %v1971_v25 = vpop.f32.mrf.mxu3 }
 0x625   : > { %v1995_v30 = vadd.f32 %v1994_v26, %v1971_v25 }
 0x626   : > { %v1997_v36 = vpop.f32.mrf.mxu0 }
 0x627   : > { %v2033_v31 = vadd.f32 %v2027_v29, %v1995_v30 }
 0x62c   : > { %v1974_v33 = vpop.f32.mrf.mxu3 }
 0x62d   : > { %v1998_v37 = vadd.f32 %v1997_v36, %v1974_v33 }
 0x62f   : > { %v2034_v18 = vadd.f32 %v2030_v39, %v1998_v37 }
 0x634   : > { %v2062_v34 = vpop.f32.mrf.mxu2 }
 0x635   : > { %v2068_v35 = vadd.f32 %v2062_v34, %v2033_v31 }
 0x637   : > { %v2074_v38 = vadd.f32 %v2509_v32, %v2068_v35 }
 0x639   : > { %v2076_v40 = vmax.f32 %v2074_v38, 0.0 }
 0x63b   : > { %2428 = vmatmul.msk.f32.vlgmr.msra.gmra.mxu1 %vm1511_vm8, %v2076_v40 }
 0x63c   : > { %v2065_v41 = vpop.f32.mrf.mxu2 }
 0x63d   : > { %v2069_v42 = vadd.f32 %v2065_v41, %v2034_v18 }
 0x63f   : > { %v2075_v43 = vadd.f32 %v2509_v32, %v2069_v42 }
 0x641   : > { %v2077_v24 = vmax.f32 %v2075_v43, 0.0 }
 0x643   : > { %2429 = vmatmul.msk.f32.gmra.mxu1 %vm1511_vm8, %v2077_v24 }
 0x6b8   : > { %v2113_v45 = vpop.f32.mrf.mxu1 }
 0x6b9   : > { %v2114_v46 = vadd.f32 %v2510_v44, %v2113_v45 }
 0x6bb   : > { %v2119_v47 = vmax.f32 %v2114_v46, 0.0 }
 0x6bd   : > { %2121 = vst [vmem:[%s3129_s10] sm:$0xff] %v2119_v47 }
 0x6c0   : > { %v2116_v48 = vpop.f32.mrf.mxu1 }
 0x6c1   : > { %v2117_v49 = vadd.f32 %v2510_v44, %v2116_v48 }
 0x6c3   : > { %v2120_v50 = vmax.f32 %v2117_v49, 0.0 }
 0x6c5   : > { %2122 = vst [vmem:[%s3129_s10 + $0x8] sm:$0xf] %v2120_v50 }
 0x6c6 PF: > { %s3130_s9 = sld [smem:[#allocation28_spill]]  ;;  %p2446_p6 = scmp.eq.s32.totalorder %s2782_s23, 2 }
 0x6c7   : > { %s2588_s3 = smov [#allocation4]  }
 0x6c8   : > { %s2131_s0 = sshll.u32 %s2588_s3, 4  ;;  %s2132_s0 = int_to_ptr.vmem [resolvable:$true] %s2131_s0 }
 0x6cc   : > { %s2133_s18 = sshll.u32 %s3130_s9, 4  ;;  %s2531_s1 = scalar_lea.hbm %s3130_s9, 16  ;;  %s2134_s18 = int_to_ptr.hbm [resolvable:$true] %s2133_s18 }
 0x6cd   : > { %s2525_s22 = sshra.s32 %s2134_s18, 4  ;;  %s2526_s22 = int_to_ptr.hbm [resolvable:$true] %s2525_s22 }
 0x6ce   : > { %s2527_s7 = scalar_lea.hbm %s2526_s22, 16  ;;  %p2532_p10 = scmp.lt.s32.totalorder %s2526_s22, %s3130_s9 }
 0x6cf   : > { %p2528_p7 = scmp.ne.s32.totalorder %s2526_s22, %s2527_s7  ;;  %p2533_p11 = scmp.lt.s32.totalorder %s2531_s1, %s2527_s7 }
 0x6d1   : > { %p2529_p8 = pnand %p2528_p7, %p2446_p6  ;;  %p2534_p12 = por %p2533_p11, %p2532_p10 }
 0x6d3   : > { %p2530_p9 = pneg %p2529_p8 }
 0x6d5   : > { %p2535_p13 = pnand %p2534_p12, %p2530_p9 }
 0x6d7   : > { %2538 = shalt.err (!%p2535_p13)
}
 0x6d8   : > { %s2589_s2 = smov 128   ;;  %s2590_s3 = smov 8  }
 0x6d9   : > { %2443 = dma.vmem_to_hbm [thread:$0]  (%p2446_p6), %s2132_s0, 256, %s2134_s18, [#allocation5], %s2589_s2, %s2589_s2, %s2590_s3  }
 0x6da   : > { %2544 = dma.done.wait (%p2446_p6), [#allocation5], 256  }
 0x6db   : > { %2546 = vsyncadd (%p2446_p6), [#allocation5], 4294967040 }
 0x6dc PF: > { %s3131_s4 = sld [smem:[#allocation31_spill]] }
 0x6e2   : > { %s83_s22 = sadd.s32 1, %s3131_s4  }
 0x6e3   : > { %p80_p0 = scmp.ge.s32.totalorder %s83_s22, 5  }
 0x6e5   :  { %82 = sbr.rel (!%p80_p0) target bundleno = 68 (0x44), region = 281 }
 0x6ea   :  { %2165 = vsyncpa [#allocation5], 1 }
 0x6eb   :  { %2167 = vsyncpa [#allocation5 + $0x1], 1 }

</bundles_post_ra>
